<compile_context>
chip_gen: v6e
topology: v6e:2x2x1
jax: 0.10.0
libtpu: 0.0.40
codegen_flags: <defaults>
</compile_context>

<pallas_src>
import functools

import jax
import jax.numpy as jnp
from jax.experimental import pallas as pl
from jax.experimental.pallas import tpu as pltpu

HIDDEN = 256  # fixed by the module definition


def vae_forward_kernel(
    x_ref, eps_ref,
    w1_ref, b1_ref,   # encoder Linear(input_dim -> 256)
    w2_ref, b2_ref,   # encoder Linear(256 -> 2*latent), columns = [mean | log_var]
    w3_ref, b3_ref,   # decoder Linear(latent -> 256)
    w4_ref, b4_ref,   # decoder Linear(256 -> input_dim)
    dec_ref, enc_ref,
):
    f32, bf16 = jnp.float32, jnp.bfloat16
    latent = eps_ref.shape[-1]

    # ---- encoder layer 1: in-kernel bf16 cast (VPU work hidden under the DMA),
    #      bf16 MXU matmul with f32 accumulation, f32 elementwise ----
    x = x_ref[...].astype(bf16)
    h1 = jnp.dot(x, w1_ref[...], preferred_element_type=f32)
    h1 = jnp.maximum(h1 + b1_ref[...], 0.0).astype(bf16)

    # ---- encoder head: single fused matmul -> packed [mean | log_var] ----
    enc = jnp.dot(h1, w2_ref[...], preferred_element_type=f32) + b2_ref[...]
    enc_ref[...] = enc          # one compact store; wrapper slices (== chunk(2, -1))

    mean = enc[:, :latent]
    log_var = enc[:, latent:]

    # ---- reparameterize: z = mean + eps * exp(0.5 * log_var)  (f32 math, EUP exp) ----
    std = jnp.exp(0.5 * log_var)
    z = (mean + eps_ref[...] * std).astype(bf16)

    # ---- decoder ----
    h2 = jnp.dot(z, w3_ref[...], preferred_element_type=f32)
    h2 = jnp.maximum(h2 + b3_ref[...], 0.0).astype(bf16)
    logits = jnp.dot(h2, w4_ref[...], preferred_element_type=f32) + b4_ref[...]

    # exact sigmoid: result stays in (0,1); exp runs on the EUP slot
    dec_ref[...] = (1.0 / (1.0 + jnp.exp(-logits))).astype(dec_ref.dtype)


def _cdiv(a, b):
    return -(-a // b)


def _round_up(n, m):
    return _cdiv(n, m) * m


def prepare_params(params):
    """One-time weight prep (hoisted out of the per-call path; cache the result).
    bf16 weights for the MXU, f32 bias rows. w2 keeps PyTorch's [mean | log_var]
    column order so the kernel's fused head matmul emits `encoded` directly."""
    bf16, f32 = jnp.bfloat16, jnp.float32
    row = lambda b: jnp.asarray(b, f32).reshape(1, -1)
    return dict(
        w1=jnp.asarray(params["w1"], bf16), b1=row(params["b1"]),
        w2=jnp.asarray(params["w2"], bf16), b2=row(params["b2"]),
        w3=jnp.asarray(params["w3"], bf16), b3=row(params["b3"]),
        w4=jnp.asarray(params["w4"], bf16), b4=row(params["b4"]),
    )


@functools.partial(jax.jit, static_argnames=("batch_tile",))
def vae_forward(x, eps, prep, *, batch_tile=1024):
    """x: [B, input_dim] f32, eps: [B, latent_dim] f32, prep: prepare_params(...)."""
    B, input_dim = x.shape
    latent_dim = eps.shape[-1]
    hidden = prep["w1"].shape[-1]
    f32 = jnp.float32

    # Batch tiling: at least 2 grid steps (so both v7x TensorCores get work), an even
    # number of tiles for larger batches, each tile at most `batch_tile` rows; pad
    # only to the 8-row sublane granule of the chosen tile, never a whole extra tile.
    b8 = _round_up(B, 8)
    n_tiles = max(2, _cdiv(b8, batch_tile))
    if n_tiles > 2 and n_tiles % 2:
        n_tiles += 1
    tb = _round_up(_cdiv(b8, n_tiles), 8)
    b_pad = tb * n_tiles

    if b_pad != B:   # row-pad only; x/eps keep native f32 (bf16 cast happens in-kernel)
        x = jnp.pad(x, ((0, b_pad - B), (0, 0)))
        eps = jnp.pad(eps, ((0, b_pad - B), (0, 0)))

    def act_spec(d):
        return pl.BlockSpec((tb, d), lambda i: (i, 0))

    def const_spec(arr):   # weights: constant index_map -> resident across grid steps
        return pl.BlockSpec(arr.shape, lambda i: (0, 0))

    in_specs = [
        act_spec(input_dim),                       # x (native f32)
        act_spec(latent_dim),                      # eps (natural width, no lane padding)
        const_spec(prep["w1"]), const_spec(prep["b1"]),
        const_spec(prep["w2"]), const_spec(prep["b2"]),
        const_spec(prep["w3"]), const_spec(prep["b3"]),
        const_spec(prep["w4"]), const_spec(prep["b4"]),
    ]
    out_specs = (
        act_spec(input_dim),           # decoded
        act_spec(2 * latent_dim),      # packed [mean | log_var]
    )
    out_shape = (
        jax.ShapeDtypeStruct((b_pad, input_dim), f32),
        jax.ShapeDtypeStruct((b_pad, 2 * latent_dim), f32),
    )

    # Advisory cost hint so XLA can overlap this small custom call with neighbours.
    matmul_flops = 2 * b_pad * hidden * (2 * input_dim + 3 * latent_dim)
    weight_bytes = 2 * hidden * (2 * input_dim + 3 * latent_dim) + 4 * (3 * hidden + input_dim)
    io_bytes = 4 * b_pad * (2 * input_dim + 3 * latent_dim)
    cost = pl.CostEstimate(
        flops=int(matmul_flops),
        transcendentals=int(b_pad * (latent_dim + input_dim)),
        bytes_accessed=int(io_bytes + weight_bytes),
    )

    dec, enc = pl.pallas_call(
        vae_forward_kernel,
        out_shape=out_shape,
        grid=(n_tiles,),
        in_specs=in_specs,
        out_specs=out_specs,
        compiler_params=pltpu.CompilerParams(
            dimension_semantics=("parallel",),   # megacore split of the batch grid
        ),
        cost_estimate=cost,
    )(x, eps, prep["w1"], prep["b1"], prep["w2"], prep["b2"],
      prep["w3"], prep["b3"], prep["w4"], prep["b4"])

    # strip batch padding; chunk(2, dim=-1) on the packed encoder output
    return dec[:B], enc[:B, :latent_dim], enc[:B, latent_dim:]


def make_params(key, input_dim, latent_dim, hidden=HIDDEN):
    """Deterministic synthetic parameters. Weights stored as [in, out] (PyTorch-style init)."""
    ks = jax.random.split(key, 8)

    def lin(kw, kb, fan_in, fan_out):
        scale = 1.0 / jnp.sqrt(fan_in)
        w = jax.random.uniform(kw, (fan_in, fan_out), jnp.float32, -scale, scale)
        b = jax.random.uniform(kb, (fan_out,), jnp.float32, -scale, scale)
        return w, b.reshape(1, fan_out)

    w1, b1 = lin(ks[0], ks[1], input_dim, hidden)
    w2, b2 = lin(ks[2], ks[3], hidden, latent_dim * 2)
    w3, b3 = lin(ks[4], ks[5], latent_dim, hidden)
    w4, b4 = lin(ks[6], ks[7], hidden, input_dim)
    return dict(w1=w1, b1=b1, w2=w2, b2=b2, w3=w3, b3=b3, w4=w4, b4=b4)


def vae_forward_ref(x, eps, p):
    """Pure-JAX f32 reference for correctness check."""
    h1 = jnp.maximum(x @ p["w1"] + p["b1"], 0.0)
    enc = h1 @ p["w2"] + p["b2"]
    latent_dim = eps.shape[-1]
    mean, log_var = enc[:, :latent_dim], enc[:, latent_dim:]
    z = mean + eps * jnp.exp(0.5 * log_var)
    h2 = jnp.maximum(z @ p["w3"] + p["b3"], 0.0)
    dec = jax.nn.sigmoid(h2 @ p["w4"] + p["b4"])
    return dec, mean, log_var


if __name__ == "__main__":
    # torch.randn_like(std) in reparameterize is hoisted to an explicit `eps`
    # input for determinism (equivalent sampling, fixed seed).
    B, INPUT_DIM, LATENT_DIM = 512, 128, 32

    key = jax.random.PRNGKey(0)
    kx, keps, kp = jax.random.split(key, 3)

    x = jax.random.normal(kx, (B, INPUT_DIM), jnp.float32)
    eps = jax.random.normal(keps, (B, LATENT_DIM), jnp.float32)
    params = make_params(kp, INPUT_DIM, LATENT_DIM)

    prep = prepare_params(params)          # one-time weight prep, reused across calls
    dec, mean, log_var = vae_forward(x, eps, prep)
    jax.block_until_ready((dec, mean, log_var))

    dec_r, mean_r, logvar_r = vae_forward_ref(x, eps, params)
    assert dec.shape == (B, INPUT_DIM)
    assert mean.shape == (B, LATENT_DIM) and log_var.shape == (B, LATENT_DIM)
    # bf16 matmul inputs -> loosened tolerance vs the f32 reference.
    assert jnp.allclose(dec, dec_r, atol=3e-2, rtol=3e-2), "decoded mismatch"
    assert jnp.allclose(mean, mean_r, atol=3e-2, rtol=3e-2), "mean mismatch"
    assert jnp.allclose(log_var, logvar_r, atol=3e-2, rtol=3e-2), "log_var mismatch"

    print("KERNEL_OK")
</pallas_src>

<mosaic_0001>
module attributes {stable_mosaic.version = 11 : i64} {
  func.func @vae_forward_kernel(%arg0: i32, %arg1: memref<256x128xf32, #tpu.memory_space<vmem>>, %arg2: memref<256x32xf32, #tpu.memory_space<vmem>>, %arg3: memref<128x256xbf16, #tpu.memory_space<vmem>>, %arg4: memref<1x256xf32, #tpu.memory_space<vmem>>, %arg5: memref<256x64xbf16, #tpu.memory_space<vmem>>, %arg6: memref<1x64xf32, #tpu.memory_space<vmem>>, %arg7: memref<32x256xbf16, #tpu.memory_space<vmem>>, %arg8: memref<1x256xf32, #tpu.memory_space<vmem>>, %arg9: memref<256x128xbf16, #tpu.memory_space<vmem>>, %arg10: memref<1x128xf32, #tpu.memory_space<vmem>>, %arg11: memref<256x128xf32, #tpu.memory_space<vmem>>, %arg12: memref<256x64xf32, #tpu.memory_space<vmem>>) attributes {dimension_semantics = [#tpu.dimension_semantics<parallel>], iteration_bounds = array<i64: 2>, scalar_prefetch = 0 : i64, scratch_operands = 0 : i64, tpu.core_type = #tpu.core_type<tc>, window_params = [{transform_indices = @transform_0, window_bounds = array<i64: 256, 128>}, {transform_indices = @transform_1, window_bounds = array<i64: 256, 32>}, {pipeline_mode = #tpu.pipeline_mode<synchronous>, transform_indices = @transform_2, window_bounds = array<i64: 128, 256>}, {pipeline_mode = #tpu.pipeline_mode<synchronous>, transform_indices = @transform_3, window_bounds = array<i64: 1, 256>}, {pipeline_mode = #tpu.pipeline_mode<synchronous>, transform_indices = @transform_4, window_bounds = array<i64: 256, 64>}, {pipeline_mode = #tpu.pipeline_mode<synchronous>, transform_indices = @transform_5, window_bounds = array<i64: 1, 64>}, {pipeline_mode = #tpu.pipeline_mode<synchronous>, transform_indices = @transform_6, window_bounds = array<i64: 32, 256>}, {pipeline_mode = #tpu.pipeline_mode<synchronous>, transform_indices = @transform_7, window_bounds = array<i64: 1, 256>}, {pipeline_mode = #tpu.pipeline_mode<synchronous>, transform_indices = @transform_8, window_bounds = array<i64: 256, 128>}, {pipeline_mode = #tpu.pipeline_mode<synchronous>, transform_indices = @transform_9, window_bounds = array<i64: 1, 128>}, {transform_indices = @transform_10, window_bounds = array<i64: 256, 128>}, {transform_indices = @transform_11, window_bounds = array<i64: 256, 64>}]} {
    %c0 = arith.constant 0 : index
    %c0_0 = arith.constant 0 : index
    %0 = vector.load %arg1[%c0, %c0_0] : memref<256x128xf32, #tpu.memory_space<vmem>>, vector<256x128xf32>
    %1 = arith.truncf %0 : vector<256x128xf32> to vector<256x128xbf16>
    %c0_1 = arith.constant 0 : index
    %c0_2 = arith.constant 0 : index
    %2 = vector.load %arg3[%c0_1, %c0_2] : memref<128x256xbf16, #tpu.memory_space<vmem>>, vector<128x256xbf16>
    %cst = arith.constant dense<0.000000e+00> : vector<256x256xf32>
    %3 = tpu.matmul %1, %2, %cst {dimension_numbers = #tpu.dot_dimension_numbers<[1], [0], [0], [1], [0, 0, 1, 1], [], []>} : vector<256x128xbf16>, vector<128x256xbf16>, vector<256x256xf32> -> vector<256x256xf32>
    %c0_3 = arith.constant 0 : index
    %c0_4 = arith.constant 0 : index
    %4 = vector.load %arg4[%c0_3, %c0_4] : memref<1x256xf32, #tpu.memory_space<vmem>>, vector<1x256xf32>
    %5 = vector.broadcast %4 : vector<1x256xf32> to vector<256x256xf32>
    %6 = arith.addf %3, %5 : vector<256x256xf32>
    %cst_5 = arith.constant 0.000000e+00 : f32
    %7 = vector.broadcast %cst_5 : f32 to vector<256x256xf32>
    %8 = arith.maximumf %6, %7 : vector<256x256xf32>
    %9 = arith.truncf %8 : vector<256x256xf32> to vector<256x256xbf16>
    %c0_6 = arith.constant 0 : index
    %c0_7 = arith.constant 0 : index
    %10 = vector.load %arg5[%c0_6, %c0_7] : memref<256x64xbf16, #tpu.memory_space<vmem>>, vector<256x64xbf16>
    %cst_8 = arith.constant dense<0.000000e+00> : vector<256x64xf32>
    %11 = tpu.matmul %9, %10, %cst_8 {dimension_numbers = #tpu.dot_dimension_numbers<[1], [0], [0], [1], [0, 0, 1, 1], [], []>} : vector<256x256xbf16>, vector<256x64xbf16>, vector<256x64xf32> -> vector<256x64xf32>
    %c0_9 = arith.constant 0 : index
    %c0_10 = arith.constant 0 : index
    %12 = vector.load %arg6[%c0_9, %c0_10] : memref<1x64xf32, #tpu.memory_space<vmem>>, vector<1x64xf32>
    %13 = vector.broadcast %12 : vector<1x64xf32> to vector<256x64xf32>
    %14 = arith.addf %11, %13 : vector<256x64xf32>
    %c0_11 = arith.constant 0 : index
    %c0_12 = arith.constant 0 : index
    %15 = vector.load %arg12[%c0_11, %c0_12] : memref<256x64xf32, #tpu.memory_space<vmem>>, vector<256x64xf32>
    tpu.vector_store %arg12[%c0_11, %c0_12], %14 {strides = array<i32>} : memref<256x64xf32, #tpu.memory_space<vmem>>, vector<256x64xf32>,
    %16 = vector.extract_strided_slice %14 {offsets = [0, 0], sizes = [256, 32], strides = [1, 1]} : vector<256x64xf32> to vector<256x32xf32>
    %17 = vector.extract_strided_slice %14 {offsets = [0, 32], sizes = [256, 32], strides = [1, 1]} : vector<256x64xf32> to vector<256x32xf32>
    %cst_13 = arith.constant 5.000000e-01 : f32
    %18 = vector.broadcast %cst_13 : f32 to vector<256x32xf32>
    %19 = arith.mulf %18, %17 : vector<256x32xf32>
    %20 = math.exp %19 : vector<256x32xf32>
    %c0_14 = arith.constant 0 : index
    %c0_15 = arith.constant 0 : index
    %21 = vector.load %arg2[%c0_14, %c0_15] : memref<256x32xf32, #tpu.memory_space<vmem>>, vector<256x32xf32>
    %22 = arith.mulf %21, %20 : vector<256x32xf32>
    %23 = arith.addf %16, %22 : vector<256x32xf32>
    %24 = arith.truncf %23 : vector<256x32xf32> to vector<256x32xbf16>
    %c0_16 = arith.constant 0 : index
    %c0_17 = arith.constant 0 : index
    %25 = vector.load %arg7[%c0_16, %c0_17] : memref<32x256xbf16, #tpu.memory_space<vmem>>, vector<32x256xbf16>
    %cst_18 = arith.constant dense<0.000000e+00> : vector<256x256xf32>
    %26 = tpu.matmul %24, %25, %cst_18 {dimension_numbers = #tpu.dot_dimension_numbers<[1], [0], [0], [1], [0, 0, 1, 1], [], []>} : vector<256x32xbf16>, vector<32x256xbf16>, vector<256x256xf32> -> vector<256x256xf32>
    %c0_19 = arith.constant 0 : index
    %c0_20 = arith.constant 0 : index
    %27 = vector.load %arg8[%c0_19, %c0_20] : memref<1x256xf32, #tpu.memory_space<vmem>>, vector<1x256xf32>
    %28 = vector.broadcast %27 : vector<1x256xf32> to vector<256x256xf32>
    %29 = arith.addf %26, %28 : vector<256x256xf32>
    %cst_21 = arith.constant 0.000000e+00 : f32
    %30 = vector.broadcast %cst_21 : f32 to vector<256x256xf32>
    %31 = arith.maximumf %29, %30 : vector<256x256xf32>
    %32 = arith.truncf %31 : vector<256x256xf32> to vector<256x256xbf16>
    %c0_22 = arith.constant 0 : index
    %c0_23 = arith.constant 0 : index
    %33 = vector.load %arg9[%c0_22, %c0_23] : memref<256x128xbf16, #tpu.memory_space<vmem>>, vector<256x128xbf16>
    %cst_24 = arith.constant dense<0.000000e+00> : vector<256x128xf32>
    %34 = tpu.matmul %32, %33, %cst_24 {dimension_numbers = #tpu.dot_dimension_numbers<[1], [0], [0], [1], [0, 0, 1, 1], [], []>} : vector<256x256xbf16>, vector<256x128xbf16>, vector<256x128xf32> -> vector<256x128xf32>
    %c0_25 = arith.constant 0 : index
    %c0_26 = arith.constant 0 : index
    %35 = vector.load %arg10[%c0_25, %c0_26] : memref<1x128xf32, #tpu.memory_space<vmem>>, vector<1x128xf32>
    %36 = vector.broadcast %35 : vector<1x128xf32> to vector<256x128xf32>
    %37 = arith.addf %34, %36 : vector<256x128xf32>
    %cst_27 = arith.constant 0.000000e+00 : f32
    %38 = vector.broadcast %cst_27 : f32 to vector<256x128xf32>
    %39 = arith.subf %38, %37 : vector<256x128xf32>
    %40 = math.exp %39 : vector<256x128xf32>
    %cst_28 = arith.constant 1.000000e+00 : f32
    %41 = vector.broadcast %cst_28 : f32 to vector<256x128xf32>
    %42 = arith.addf %41, %40 : vector<256x128xf32>
    %cst_29 = arith.constant 1.000000e+00 : f32
    %43 = vector.broadcast %cst_29 : f32 to vector<256x128xf32>
    %44 = arith.divf %43, %42 : vector<256x128xf32>
    %c0_30 = arith.constant 0 : index
    %c0_31 = arith.constant 0 : index
    %45 = vector.load %arg11[%c0_30, %c0_31] : memref<256x128xf32, #tpu.memory_space<vmem>>, vector<256x128xf32>
    tpu.vector_store %arg11[%c0_30, %c0_31], %44 {strides = array<i32>} : memref<256x128xf32, #tpu.memory_space<vmem>>, vector<256x128xf32>,
    return
  }
  func.func @transform_0(%arg0: i32) -> (i32, i32) {
    %c0_i32 = arith.constant 0 : i32
    %c0_i32_0 = arith.constant 0 : i32
    return %arg0, %c0_i32 : i32, i32
  }
  func.func @transform_1(%arg0: i32) -> (i32, i32) {
    %c0_i32 = arith.constant 0 : i32
    %c0_i32_0 = arith.constant 0 : i32
    return %arg0, %c0_i32 : i32, i32
  }
  func.func @transform_2(%arg0: i32) -> (i32, i32) {
    %c0_i32 = arith.constant 0 : i32
    %c0_i32_0 = arith.constant 0 : i32
    %c0_i32_1 = arith.constant 0 : i32
    return %c0_i32, %c0_i32_0 : i32, i32
  }
  func.func @transform_3(%arg0: i32) -> (i32, i32) {
    %c0_i32 = arith.constant 0 : i32
    %c0_i32_0 = arith.constant 0 : i32
    %c0_i32_1 = arith.constant 0 : i32
    return %c0_i32, %c0_i32_0 : i32, i32
  }
  func.func @transform_4(%arg0: i32) -> (i32, i32) {
    %c0_i32 = arith.constant 0 : i32
    %c0_i32_0 = arith.constant 0 : i32
    %c0_i32_1 = arith.constant 0 : i32
    return %c0_i32, %c0_i32_0 : i32, i32
  }
  func.func @transform_5(%arg0: i32) -> (i32, i32) {
    %c0_i32 = arith.constant 0 : i32
    %c0_i32_0 = arith.constant 0 : i32
    %c0_i32_1 = arith.constant 0 : i32
    return %c0_i32, %c0_i32_0 : i32, i32
  }
  func.func @transform_6(%arg0: i32) -> (i32, i32) {
    %c0_i32 = arith.constant 0 : i32
    %c0_i32_0 = arith.constant 0 : i32
    %c0_i32_1 = arith.constant 0 : i32
    return %c0_i32, %c0_i32_0 : i32, i32
  }
  func.func @transform_7(%arg0: i32) -> (i32, i32) {
    %c0_i32 = arith.constant 0 : i32
    %c0_i32_0 = arith.constant 0 : i32
    %c0_i32_1 = arith.constant 0 : i32
    return %c0_i32, %c0_i32_0 : i32, i32
  }
  func.func @transform_8(%arg0: i32) -> (i32, i32) {
    %c0_i32 = arith.constant 0 : i32
    %c0_i32_0 = arith.constant 0 : i32
    %c0_i32_1 = arith.constant 0 : i32
    return %c0_i32, %c0_i32_0 : i32, i32
  }
  func.func @transform_9(%arg0: i32) -> (i32, i32) {
    %c0_i32 = arith.constant 0 : i32
    %c0_i32_0 = arith.constant 0 : i32
    %c0_i32_1 = arith.constant 0 : i32
    return %c0_i32, %c0_i32_0 : i32, i32
  }
  func.func @transform_10(%arg0: i32) -> (i32, i32) {
    %c0_i32 = arith.constant 0 : i32
    %c0_i32_0 = arith.constant 0 : i32
    return %arg0, %c0_i32 : i32, i32
  }
  func.func @transform_11(%arg0: i32) -> (i32, i32) {
    %c0_i32 = arith.constant 0 : i32
    %c0_i32_0 = arith.constant 0 : i32
    return %arg0, %c0_i32 : i32, i32
  }
}

</mosaic_0001>

<bundles_post_ra>
// kernel: vae_forward.1
= control target key start
LH: loop header
LB: loop body
LE: loop exit
PB: predicated region body
PF: predicated region fallthrough
CT: control target
= control target key end

     0   :  { %17 = vsyncpa [#allocation3], 0  ;;  %s4195_s0 = inlined_call_operand.vmem [shape: f32[512,128], index: 0, kind: input, shape index: {}]   ;;  %s4196_s1 = inlined_call_operand.vmem [shape: f32[512,32], index: 1, kind: input, shape index: {}]   ;;  %s4197_s2 = inlined_call_operand.vmem [shape: bf16[128,256], index: 2, kind: input, shape index: {}]   ;;  %s4198_s3 = inlined_call_operand.vmem [shape: f32[1,256], index: 3, kind: input, shape index: {}]   ;;  %s4199_s4 = inlined_call_operand.vmem [shape: bf16[256,64], index: 4, kind: input, shape index: {}]   ;;  %s4200_s5 = inlined_call_operand.vmem [shape: f32[1,64], index: 5, kind: input, shape index: {}]   ;;  %s4201_s6 = inlined_call_operand.vmem [shape: bf16[32,256], index: 6, kind: input, shape index: {}]   ;;  %s4202_s7 = inlined_call_operand.vmem [shape: f32[1,256], index: 7, kind: input, shape index: {}]   ;;  %s4203_s8 = inlined_call_operand.vmem [shape: bf16[256,128], index: 8, kind: input, shape index: {}]   ;;  %s4204_s9 = inlined_call_operand.vmem [shape: f32[1,128], index: 9, kind: input, shape index: {}]   ;;  %s4205_s10 = inlined_call_operand.hbm [shape: f32[512,128], index: 10, kind: output, shape index: {0}]   ;;  %s4206_s11 = inlined_call_operand.vmem [shape: f32[512,64], index: 11, kind: output, shape index: {1}]  }
   0x1   :  { %19 = vsyncpa [#allocation3 + $0x1], 0  ;;  %s3286_s17 = smov 0   ;;  %s3288_s18 = smov 0  }
   0x2   :  { %s3290_s19 = smov 0   ;;  %s3292_s20 = smov 0  }
   0x3 LB: > { %s3307_s21 = sadd.s32 4294967295, %s3219_s20   ;;  %s2551_s22 = sadd.s32 4294967294, %s3219_s20   ;;  %s3219_s20 = sphi %s3292_s20, %s4214_s20   ;;  %s3215_s19 = sphi %s3290_s19, %s4213_s19   ;;  %s3211_s18 = sphi %s3288_s18, %s4212_s18   ;;  %s3207_s17 = sphi %s3286_s17, %s4211_s17  }
   0x4   : > { %s3311_s23 = sadd.s32 1, %s3219_s20   ;;  %s252_s24 = sadd.s32 1, %s3215_s19 }
   0x5   : > { %s249_s25 = ssub.s32 %s3219_s20, %s3311_s23  ;;  %p262_p0 = scmp.ne.s32.totalorder %s3215_s19, %s3211_s18 }
   0x6   : > { %p250_p1 = scmp.eq.s32.totalorder %s249_s25, 0  ;;  %p263_p2 = scmp.eq.s32.totalorder %s3307_s21, 1 }
   0x7   : > { %p268_p3 = scmp.ne.s32.totalorder %s3211_s18, %s3207_s17  ;;  %p269_p4 = scmp.eq.s32.totalorder %s2551_s22, 1 }
   0x8   : > { %s3322_s26 = scalar_select %p250_p1, %s3215_s19, %s252_s24  }
   0x9   : > { %p3324_p5 = por %p263_p2, %p262_p0  ;;  %p3328_p6 = por %p269_p4, %p268_p3 }
   0xa   : > { %4207 = sst [smem:[#allocation5_spill]] %s3322_s26  ;;  %p2554_p7 = scmp.ge.s32.totalorder %s3219_s20, 1 }
   0xb   : > { %p355_p8 = scmp.lt.s32.totalorder %s3219_s20, 3 }
   0xd   : > { %p356_p9 = pnand %p2554_p7, %p355_p8 }
   0xe   : > { %s2556_s14 = sshll.u32 (!%p356_p9), %s3307_s21, 5  ;;  %s395_s29 = sand.u32 (!%p356_p9), 1, %s3211_s18  }
   0xf   : > { %359 = sbr.rel (%p356_p9) target bundleno = 1179 (0x49b), region = 60  ;;  %p406_p10 = scmp.lt.s32.totalorder (!%p356_p9), %s2556_s14, 63 }
  0x10   : > { %s2637_s12 = sshll.u32 (!%p356_p9), %s3307_s21, 12  ;;  %s4155_s25 = scalar_lea.sflag (!%p356_p9), [#allocation3], %s395_s29 }
  0x11   : > { %s4148_s16 = scalar_lea.hbm (!%p356_p9), %s4205_s10, %s2637_s12  ;;  %s3223_s21 = smov (!%p356_p9), [#allocation2]  }
  0x14   : > { %v2905_v0 = vld [vmem:[%s4197_s2 + $0x74] ss:$8 sps:$4 sm:$0xff]   ;;  %v2907_v1 = vld [vmem:[%s4197_s2 + $0x70] ss:$8 sps:$4 sm:$0xff]   ;;  %v3221_v2 = vmov 0   ;;  %s4216_s14 = smov (!%p406_p10, %s2556_s14), 63 }
  0x15   : > { %613 = vmatprep.mubr.bf16.mxu0 %v3221_v2  ;;  %581 = vmatprep.subr.bf16.mxu0 %v2905_v0  ;;  %v2908_v3 = vld [vmem:[%s4197_s2 + $0x64] ss:$8 sps:$4 sm:$0xff]   ;;  %v2910_v4 = vld [vmem:[%s4197_s2 + $0x60] ss:$8 sps:$4 sm:$0xff]   ;;  %v2911_v5 = vld [vmem:[%s4197_s2 + $0x54] ss:$8 sps:$4 sm:$0xff]  }
  0x16   : > { %582 = vmatpush1.bf16.msra.mxu0 %v2907_v1  ;;  %v2913_v6 = vld [vmem:[%s4197_s2 + $0x50] ss:$8 sps:$4 sm:$0xff]   ;;  %v2914_v7 = vld [vmem:[%s4197_s2 + $0x44] ss:$8 sps:$4 sm:$0xff]   ;;  %v2916_v8 = vld [vmem:[%s4197_s2 + $0x40] ss:$8 sps:$4 sm:$0xff]  }
  0x17   : > { %583 = vmatprep.subr.bf16.mxu0 %v2908_v3  ;;  %v2917_v9 = vld [vmem:[%s4197_s2 + $0x34] ss:$8 sps:$4 sm:$0xff]   ;;  %v2919_v10 = vld [vmem:[%s4197_s2 + $0x30] ss:$8 sps:$4 sm:$0xff]   ;;  %v2920_v11 = vld [vmem:[%s4197_s2 + $0x24] ss:$8 sps:$4 sm:$0xff]  }
  0x18   : > { %v2922_v12 = vld [vmem:[%s4197_s2 + $0x20] ss:$8 sps:$4 sm:$0xff]   ;;  %v2923_v13 = vld [vmem:[%s4197_s2 + $0x14] ss:$8 sps:$4 sm:$0xff]   ;;  %s3375_s24 = sshll.u32 %s4216_s14, 3  ;;  %vm1166_vm0 = vcmask 523264  }
  0x19   : > { %v2925_v14 = vld [vmem:[%s4197_s2 + $0x10] ss:$8 sps:$4 sm:$0xff]   ;;  %v2926_v15 = vld [vmem:[%s4197_s2 + $0x4] ss:$8 sps:$4 sm:$0xff]   ;;  %s3387_s26 = scalar_lea.vmem %s4195_s0, %s3375_s24  ;;  %v2928_v19 = vld [vmem:[%s4197_s2] ss:$8 sps:$4 sm:$0xff]   ;;  %s3588_s22 = scalar_lea.vmem %s4206_s11, %s3375_s24 }
  0x1a   : > { %584 = vmatpush1.bf16.msra.mxu0 %v2910_v4  ;;  %v2929_v16 = vld [vmem:[%s4199_s4 + $0x78] sm:$0xff]   ;;  %v2931_v18 = vld [vmem:[%s4199_s4 + $0x70] sm:$0xff]   ;;  %v425_v20 = vld [vmem:[%s3387_s26] sm:$0xff]  ;;  %s3222_s14 = smov 96   ;;  %vm1571_vm1 = vcmask 261120  }
  0x1b   : > { %585 = vmatprep.subr.bf16.mxu0 %v2911_v5  ;;  %v2930_v17 = vld [vmem:[%s4199_s4 + $0x38] sm:$0xff]   ;;  %v426_v21 = vld [vmem:[%s3387_s26 + $0x8] sm:$0xff]  ;;  %2638 = vmatprep.subr.bf16.mxu1 %v2929_v16  ;;  %v2932_v22 = vld [vmem:[%s4199_s4 + $0x30] sm:$0xff]  }
  0x1c   : > { %2639 = vmatpush3.bf16.msra.mxu1 %v2930_v17  ;;  %v457_v23 = vpack.c.bf16 %v426_v21, %v425_v20  ;;  %v2933_v24 = vld [vmem:[%s4199_s4 + $0x68] sm:$0xff]   ;;  %v2935_v26 = vld [vmem:[%s4199_s4 + $0x60] sm:$0xff]   ;;  %v427_v27 = vld [vmem:[%s3387_s26 + $0x10] sm:$0xff] }
  0x1d   : > { %2640 = vmatprep.subr.bf16.mxu1 %v2931_v18  ;;  %v2934_v25 = vld [vmem:[%s4199_s4 + $0x28] sm:$0xff]   ;;  %v428_v28 = vld [vmem:[%s3387_s26 + $0x18] sm:$0xff]  ;;  %v2936_v29 = vld [vmem:[%s4199_s4 + $0x20] sm:$0xff]   ;;  %v491_v18 = vlaneseq }
  0x1e   : > { %586 = vmatpush1.bf16.msra.mxu0 %v2913_v6  ;;  %v2937_v30 = vld [vmem:[%s4199_s4 + $0x58] sm:$0xff]   ;;  %v458_v31 = vpack.c.bf16 %v428_v28, %v427_v27  ;;  %v429_v33 = vld [vmem:[%s3387_s26 + $0x20] sm:$0xff]  ;;  %v430_v34 = vld [vmem:[%s3387_s26 + $0x28] sm:$0xff] }
  0x1f   : > { %587 = vmatprep.subr.bf16.mxu0 %v2914_v7  ;;  %v2938_v32 = vld [vmem:[%s4199_s4 + $0x18] sm:$0xff]   ;;  %v459_v35 = vpack.c.bf16 %v430_v34, %v429_v33  ;;  %v431_v36 = vld [vmem:[%s3387_s26 + $0x30] sm:$0xff]  ;;  %v433_v39 = vld [vmem:[%s3387_s26 + $0x40] sm:$0xff] }
  0x20   : > { %2641 = vmatpush3.bf16.msra.mxu1 %v2932_v22  ;;  %v432_v37 = vld [vmem:[%s3387_s26 + $0x38] sm:$0xff]  ;;  %v434_v40 = vld [vmem:[%s3387_s26 + $0x48] sm:$0xff]  ;;  %v435_v42 = vld [vmem:[%s3387_s26 + $0x50] sm:$0xff] }
  0x21   : > { %2642 = vmatprep.subr.bf16.mxu1 %v2933_v24  ;;  %v460_v38 = vpack.c.bf16 %v432_v37, %v431_v36  ;;  %v461_v41 = vpack.c.bf16 %v434_v40, %v433_v39  ;;  %v436_v43 = vld [vmem:[%s3387_s26 + $0x58] sm:$0xff]  ;;  %v437_v45 = vld [vmem:[%s3387_s26 + $0x60] sm:$0xff]  ;;  %v438_v46 = vld [vmem:[%s3387_s26 + $0x68] sm:$0xff] }
  0x22   : > { %588 = vmatpush1.bf16.msra.mxu0 %v2916_v8  ;;  %v462_v44 = vpack.c.bf16 %v436_v43, %v435_v42  ;;  %v463_v47 = vpack.c.bf16 %v438_v46, %v437_v45  ;;  %v439_v48 = vld [vmem:[%s3387_s26 + $0x70] sm:$0xff]  ;;  %v440_v49 = vld [vmem:[%s3387_s26 + $0x78] sm:$0xff]  ;;  %v441_v51 = vld [vmem:[%s3387_s26 + $0x80] sm:$0xff] }
  0x23   : > { %589 = vmatprep.subr.bf16.mxu0 %v2917_v9  ;;  %v464_v50 = vpack.c.bf16 %v440_v49, %v439_v48  ;;  %v442_v52 = vld [vmem:[%s3387_s26 + $0x88] sm:$0xff]  ;;  %v2939_v54 = vld [vmem:[%s4199_s4 + $0x50] sm:$0xff]   ;;  %v444_v56 = vld [vmem:[%s3387_s26 + $0x98] sm:$0xff] }
  0x24   : > { %2643 = vmatpush3.bf16.msra.mxu1 %v2934_v25  ;;  %v465_v53 = vpack.c.bf16 %v442_v52, %v441_v51  ;;  %v443_v55 = vld [vmem:[%s3387_s26 + $0x90] sm:$0xff]  ;;  %v2941_v59 = vld [vmem:[%s4199_s4 + $0x48] sm:$0xff]   ;;  %v2943_v61 = vld [vmem:[%s4199_s4 + $0x40] sm:$0xff]  }
  0x25   : > { %2644 = vmatprep.subr.bf16.mxu1 %v2935_v26  ;;  %v2940_v57 = vld [vmem:[%s4199_s4 + $0x10] sm:$0xff]   ;;  %v466_v58 = vpack.c.bf16 %v444_v56, %v443_v55  ;;  %v2942_v60 = vld [vmem:[%s4199_s4 + $0x8] sm:$0xff]   ;;  %v445_v62 = vld [vmem:[%s3387_s26 + $0xa0] sm:$0xff] }
  0x26   : > { %590 = vmatpush1.bf16.msra.mxu0 %v2919_v10  ;;  %v446_v63 = vld [vmem:[%s3387_s26 + $0xa8] sm:$0xff]  ;;  %v2944_v0 = vld [vmem:[%s4199_s4] sm:$0xff]   ;;  %v447_v3 = vld [vmem:[%s3387_s26 + $0xb0] sm:$0xff] }
  0x27   : > { %591 = vmatprep.subr.bf16.mxu0 %v2920_v11  ;;  %v467_v1 = vpack.c.bf16 %v446_v63, %v445_v62  ;;  %v448_v4 = vld [vmem:[%s3387_s26 + $0xb8] sm:$0xff]  ;;  %v449_v6 = vld [vmem:[%s3387_s26 + $0xc0] sm:$0xff]  ;;  %v450_v7 = vld [vmem:[%s3387_s26 + $0xc8] sm:$0xff] }
  0x28   : > { %2645 = vmatpush3.bf16.msra.mxu1 %v2936_v29  ;;  %v468_v5 = vpack.c.bf16 %v448_v4, %v447_v3  ;;  %v469_v8 = vpack.c.bf16 %v450_v7, %v449_v6  ;;  %v451_v9 = vld [vmem:[%s3387_s26 + $0xd0] sm:$0xff]  ;;  %v452_v10 = vld [vmem:[%s3387_s26 + $0xd8] sm:$0xff]  ;;  %v489_v22 = vld [vmem:[%s4198_s3] sm:$0x3] }
  0x29   : > { %2646 = vmatprep.subr.bf16.mxu1 %v2937_v30  ;;  %v470_v11 = vpack.c.bf16 %v452_v10, %v451_v9  ;;  %v456_v16 = vld [vmem:[%s3387_s26 + $0xf8] sm:$0xff] }
  0x2a   : > { %592 = vmatpush1.bf16.msra.mxu0 %v2922_v12  ;;  %v453_v12 = vld [vmem:[%s3387_s26 + $0xe0] sm:$0xff] }
  0x2b   : > { %593 = vmatprep.subr.bf16.mxu0 %v2923_v13  ;;  %v454_v13 = vld [vmem:[%s3387_s26 + $0xe8] sm:$0xff] }
  0x2c   : > { %2647 = vmatpush3.bf16.msra.mxu1 %v2938_v32 }
  0x2d   : > { %2648 = vmatprep.subr.bf16.mxu1 %v2939_v54 }
  0x2e   : > { %594 = vmatpush1.bf16.msra.mxu0 %v2925_v14  ;;  %v471_v14 = vpack.c.bf16 %v454_v13, %v453_v12 }
  0x2f   : > { %595 = vmatprep.subr.bf16.mxu0 %v2926_v15  ;;  %v455_v15 = vld [vmem:[%s3387_s26 + $0xf0] sm:$0xff] }
  0x30   : > { %2649 = vmatpush3.bf16.msra.mxu1 %v2940_v57  ;;  %v472_v17 = vpack.c.bf16 %v456_v16, %v455_v15 }
  0x31   : > { %2650 = vmatprep.subr.bf16.mxu1 %v2941_v59 }
  0x32   : > { %596 = vmatpush1.bf16.msra.mxu0 %v2928_v19  ;;  %v3488_v19 = vshrl.u32 %v491_v18, 7 }
  0x34   : > { %2651 = vmatpush3.bf16.msra.mxu1 %v2942_v60  ;;  %v497_v20 = vsub.s32 1, %v3488_v19  ;;  %v493_v21 = vsub.s32 0, %v3488_v19 }
  0x35   : > { %614 = vmatmul.mubr.bf16.vlgmr.msra.gmra.mxu0 %v457_v23  ;;  %2652 = vmatprep.subr.bf16.mxu1 %v2943_v61 }
  0x36   : > { %623 = vmatprep.mubr.bf16.mxu0 %v3221_v2  ;;  %v3497_v24 = vrot.slane %v489_v22, %v497_v20  ;;  %v3501_v25 = vrot.slane %v489_v22, %v493_v21 }
  0x38   : > { %2653 = vmatpush3.bf16.msra.mxu1 %v2944_v0 }
  0x3d   : > { %624 = vmatmul.mubr.bf16.gmra.mxu0 %v458_v31 }
  0x3e   : > { %633 = vmatprep.mubr.bf16.mxu0 %v3221_v2 }
  0x45   : > { %634 = vmatmul.mubr.bf16.gmra.mxu0 %v459_v35 }
  0x46   : > { %643 = vmatprep.mubr.bf16.mxu0 %v3221_v2 }
  0x4d   : > { %644 = vmatmul.mubr.bf16.gmra.mxu0 %v460_v38 }
  0x4e   : > { %653 = vmatprep.mubr.bf16.mxu0 %v3221_v2 }
  0x55   : > { %654 = vmatmul.mubr.bf16.gmra.mxu0 %v461_v41 }
  0x56   : > { %663 = vmatprep.mubr.bf16.mxu0 %v3221_v2 }
  0x5d   : > { %664 = vmatmul.mubr.bf16.gmra.mxu0 %v462_v44 }
  0x5e   : > { %673 = vmatprep.mubr.bf16.mxu0 %v3221_v2 }
  0x65   : > { %674 = vmatmul.mubr.bf16.gmra.mxu0 %v463_v47 }
  0x66   : > { %683 = vmatprep.mubr.bf16.mxu0 %v3221_v2 }
  0x6d   : > { %684 = vmatmul.mubr.bf16.gmra.mxu0 %v464_v50 }
  0x6e   : > { %693 = vmatprep.mubr.bf16.mxu0 %v3221_v2 }
  0x75   : > { %694 = vmatmul.mubr.bf16.gmra.mxu0 %v465_v53 }
  0x76   : > { %703 = vmatprep.mubr.bf16.mxu0 %v3221_v2 }
  0x7d   : > { %704 = vmatmul.mubr.bf16.gmra.mxu0 %v466_v58 }
  0x7e   : > { %713 = vmatprep.mubr.bf16.mxu0 %v3221_v2 }
  0x85   : > { %714 = vmatmul.mubr.bf16.gmra.mxu0 %v467_v1 }
  0x86   : > { %723 = vmatprep.mubr.bf16.mxu0 %v3221_v2 }
  0x8d   : > { %724 = vmatmul.mubr.bf16.gmra.mxu0 %v468_v5 }
  0x8e   : > { %733 = vmatprep.mubr.bf16.mxu0 %v3221_v2 }
  0x95   : > { %734 = vmatmul.mubr.bf16.gmra.mxu0 %v469_v8 }
  0x96   : > { %743 = vmatprep.mubr.bf16.mxu0 %v3221_v2 }
  0x9d   : > { %744 = vmatmul.mubr.bf16.gmra.mxu0 %v470_v11 }
  0x9e   : > { %753 = vmatprep.mubr.bf16.mxu0 %v3221_v2 }
  0xa5   : > { %754 = vmatmul.mubr.bf16.gmra.mxu0 %v471_v14 }
  0xa6   : > { %763 = vmatprep.mubr.bf16.mxu0 %v3221_v2 }
  0xad   : > { %764 = vmatmul.mubr.bf16.gmra.mxu0 %v472_v17 }
  0xae   : > { %1652 = vmatprep.mubr.bf16.mxu0 %v3221_v2 }
  0xf5   : > { %v615_v23 = vpop.f32.mrf.mxu0 }
  0xf6   : > { %v616_v30 = vadd.f32 %v615_v23, %v3501_v25 }
  0xf7   : > { %v617_v26 = vpop.f32.mrf.mxu0 }
  0xf8   : > { %v618_v28 = vadd.f32 %v617_v26, %v3497_v24  ;;  %v774_v37 = vmax.f32 %v616_v30, 0.0 }
  0xf9   : > { %v619_v27 = vpop.f32.mrf.mxu0 }
  0xfa   : > { %v620_v29 = vadd.f32 %v619_v27, %v3501_v25  ;;  %v775_v35 = vmax.f32 %v618_v28, 0.0 }
  0xfb   : > { %v621_v31 = vpop.f32.mrf.mxu0 }
  0xfc   : > { %v622_v32 = vadd.f32 %v621_v31, %v3497_v24  ;;  %v776_v33 = vmax.f32 %v620_v29, 0.0 }
  0xfd   : > { %v625_v34 = vpop.f32.mrf.mxu0 }
  0xfe   : > { %v777_v36 = vmax.f32 %v622_v32, 0.0  ;;  %v838_v40 = vpack.c.bf16 %v776_v33, %v774_v37  ;;  %v626_v44 = vadd.f32 %v625_v34, %v3501_v25 }
  0xff   : > { %v627_v38 = vpop.f32.mrf.mxu0 }
 0x100   : > { %v839_v39 = vpack.c.bf16 %v777_v36, %v775_v35  ;;  %v628_v42 = vadd.f32 %v627_v38, %v3497_v24  ;;  %v778_v51 = vmax.f32 %v626_v44, 0.0 }
 0x101   : > { %v629_v41 = vpop.f32.mrf.mxu0 }
 0x102   : > { %v630_v43 = vadd.f32 %v629_v41, %v3501_v25  ;;  %1037 = vmatprep.mubr.bf16.mxu1 %v839_v39  ;;  %v779_v49 = vmax.f32 %v628_v42, 0.0 }
 0x103   : > { %v631_v45 = vpop.f32.mrf.mxu0  ;;  %1038 = vmatmul.mubr.bf16.vlgmr.msra.gmra.mxu1 %v838_v40 }
 0x104   : > { %v632_v46 = vadd.f32 %v631_v45, %v3497_v24  ;;  %v780_v47 = vmax.f32 %v630_v43, 0.0 }
 0x105   : > { %v635_v48 = vpop.f32.mrf.mxu0 }
 0x106   : > { %v781_v50 = vmax.f32 %v632_v46, 0.0  ;;  %v840_v54 = vpack.c.bf16 %v780_v47, %v778_v51  ;;  %v636_v58 = vadd.f32 %v635_v48, %v3501_v25 }
 0x107   : > { %v637_v52 = vpop.f32.mrf.mxu0 }
 0x108   : > { %v841_v53 = vpack.c.bf16 %v781_v50, %v779_v49  ;;  %v638_v56 = vadd.f32 %v637_v52, %v3497_v24  ;;  %v782_v1 = vmax.f32 %v636_v58, 0.0 }
 0x109   : > { %v639_v55 = vpop.f32.mrf.mxu0 }
 0x10a   : > { %v640_v57 = vadd.f32 %v639_v55, %v3501_v25  ;;  %1045 = vmatprep.mubr.bf16.mxu1 %v841_v53  ;;  %v783_v63 = vmax.f32 %v638_v56, 0.0 }
 0x10b   : > { %v641_v59 = vpop.f32.mrf.mxu0  ;;  %1046 = vmatmul.mubr.bf16.gmra.mxu1 %v840_v54 }
 0x10c   : > { %v642_v60 = vadd.f32 %v641_v59, %v3497_v24  ;;  %v784_v61 = vmax.f32 %v640_v57, 0.0 }
 0x10d   : > { %v645_v62 = vpop.f32.mrf.mxu0 }
 0x10e   : > { %v785_v0 = vmax.f32 %v642_v60, 0.0  ;;  %v842_v5 = vpack.c.bf16 %v784_v61, %v782_v1  ;;  %v646_v9 = vadd.f32 %v645_v62, %v3501_v25 }
 0x10f   : > { %v647_v3 = vpop.f32.mrf.mxu0 }
 0x110   : > { %v843_v4 = vpack.c.bf16 %v785_v0, %v783_v63  ;;  %v648_v7 = vadd.f32 %v647_v3, %v3497_v24  ;;  %v786_v16 = vmax.f32 %v646_v9, 0.0 }
 0x111   : > { %v649_v6 = vpop.f32.mrf.mxu0 }
 0x112   : > { %v650_v8 = vadd.f32 %v649_v6, %v3501_v25  ;;  %1053 = vmatprep.mubr.bf16.mxu1 %v843_v4  ;;  %v787_v14 = vmax.f32 %v648_v7, 0.0 }
 0x113   : > { %v651_v10 = vpop.f32.mrf.mxu0  ;;  %1054 = vmatmul.mubr.bf16.gmra.mxu1 %v842_v5 }
 0x114   : > { %v652_v11 = vadd.f32 %v651_v10, %v3497_v24  ;;  %v788_v12 = vmax.f32 %v650_v8, 0.0 }
 0x115   : > { %v655_v13 = vpop.f32.mrf.mxu0 }
 0x116   : > { %v789_v15 = vmax.f32 %v652_v11, 0.0  ;;  %v844_v22 = vpack.c.bf16 %v788_v12, %v786_v16  ;;  %v656_v28 = vadd.f32 %v655_v13, %v3501_v25 }
 0x117   : > { %v657_v17 = vpop.f32.mrf.mxu0 }
 0x118   : > { %v845_v18 = vpack.c.bf16 %v789_v15, %v787_v14  ;;  %v658_v26 = vadd.f32 %v657_v17, %v3497_v24  ;;  %v790_v35 = vmax.f32 %v656_v28, 0.0 }
 0x119   : > { %v659_v23 = vpop.f32.mrf.mxu0 }
 0x11a   : > { %v660_v27 = vadd.f32 %v659_v23, %v3501_v25  ;;  %1061 = vmatprep.mubr.bf16.mxu1 %v845_v18  ;;  %v791_v33 = vmax.f32 %v658_v26, 0.0 }
 0x11b   : > { %v661_v29 = vpop.f32.mrf.mxu0  ;;  %1062 = vmatmul.mubr.bf16.gmra.mxu1 %v844_v22 }
 0x11c   : > { %v662_v30 = vadd.f32 %v661_v29, %v3497_v24  ;;  %v792_v31 = vmax.f32 %v660_v27, 0.0 }
 0x11d   : > { %v665_v32 = vpop.f32.mrf.mxu0 }
 0x11e   : > { %v793_v34 = vmax.f32 %v662_v30, 0.0  ;;  %v846_v38 = vpack.c.bf16 %v792_v31, %v790_v35  ;;  %v666_v42 = vadd.f32 %v665_v32, %v3501_v25 }
 0x11f   : > { %v667_v36 = vpop.f32.mrf.mxu0 }
 0x120   : > { %v847_v37 = vpack.c.bf16 %v793_v34, %v791_v33  ;;  %v668_v40 = vadd.f32 %v667_v36, %v3497_v24  ;;  %v794_v49 = vmax.f32 %v666_v42, 0.0 }
 0x121   : > { %v669_v39 = vpop.f32.mrf.mxu0 }
 0x122   : > { %v670_v41 = vadd.f32 %v669_v39, %v3501_v25  ;;  %1069 = vmatprep.mubr.bf16.mxu1 %v847_v37  ;;  %v795_v47 = vmax.f32 %v668_v40, 0.0 }
 0x123   : > { %v671_v43 = vpop.f32.mrf.mxu0  ;;  %1070 = vmatmul.mubr.bf16.gmra.mxu1 %v846_v38 }
 0x124   : > { %v672_v44 = vadd.f32 %v671_v43, %v3497_v24  ;;  %v796_v45 = vmax.f32 %v670_v41, 0.0 }
 0x125   : > { %v675_v46 = vpop.f32.mrf.mxu0 }
 0x126   : > { %v797_v48 = vmax.f32 %v672_v44, 0.0  ;;  %v848_v52 = vpack.c.bf16 %v796_v45, %v794_v49  ;;  %v676_v56 = vadd.f32 %v675_v46, %v3501_v25 }
 0x127   : > { %v677_v50 = vpop.f32.mrf.mxu0 }
 0x128   : > { %v849_v51 = vpack.c.bf16 %v797_v48, %v795_v47  ;;  %v678_v54 = vadd.f32 %v677_v50, %v3497_v24  ;;  %v798_v63 = vmax.f32 %v676_v56, 0.0 }
 0x129   : > { %v679_v53 = vpop.f32.mrf.mxu0 }
 0x12a   : > { %v680_v55 = vadd.f32 %v679_v53, %v3501_v25  ;;  %1077 = vmatprep.mubr.bf16.mxu1 %v849_v51  ;;  %v799_v61 = vmax.f32 %v678_v54, 0.0 }
 0x12b   : > { %v681_v57 = vpop.f32.mrf.mxu0  ;;  %1078 = vmatmul.mubr.bf16.gmra.mxu1 %v848_v52 }
 0x12c   : > { %v682_v58 = vadd.f32 %v681_v57, %v3497_v24  ;;  %v800_v59 = vmax.f32 %v680_v55, 0.0 }
 0x12d   : > { %v685_v60 = vpop.f32.mrf.mxu0 }
 0x12e   : > { %v801_v62 = vmax.f32 %v682_v58, 0.0  ;;  %v850_v3 = vpack.c.bf16 %v800_v59, %v798_v63  ;;  %v686_v7 = vadd.f32 %v685_v60, %v3501_v25 }
 0x12f   : > { %v687_v0 = vpop.f32.mrf.mxu0 }
 0x130   : > { %v851_v1 = vpack.c.bf16 %v801_v62, %v799_v61  ;;  %v688_v5 = vadd.f32 %v687_v0, %v3497_v24  ;;  %v802_v14 = vmax.f32 %v686_v7, 0.0 }
 0x131   : > { %v689_v4 = vpop.f32.mrf.mxu0 }
 0x132   : > { %v690_v6 = vadd.f32 %v689_v4, %v3501_v25  ;;  %1085 = vmatprep.mubr.bf16.mxu1 %v851_v1  ;;  %v803_v12 = vmax.f32 %v688_v5, 0.0 }
 0x133   : > { %v691_v8 = vpop.f32.mrf.mxu0  ;;  %1086 = vmatmul.mubr.bf16.gmra.mxu1 %v850_v3 }
 0x134   : > { %v692_v9 = vadd.f32 %v691_v8, %v3497_v24  ;;  %v804_v10 = vmax.f32 %v690_v6, 0.0 }
 0x135   : > { %v695_v11 = vpop.f32.mrf.mxu0 }
 0x136   : > { %v805_v13 = vmax.f32 %v692_v9, 0.0  ;;  %v852_v17 = vpack.c.bf16 %v804_v10, %v802_v14  ;;  %v696_v26 = vadd.f32 %v695_v11, %v3501_v25 }
 0x137   : > { %v697_v15 = vpop.f32.mrf.mxu0 }
 0x138   : > { %v853_v16 = vpack.c.bf16 %v805_v13, %v803_v12  ;;  %v698_v22 = vadd.f32 %v697_v15, %v3497_v24  ;;  %v806_v33 = vmax.f32 %v696_v26, 0.0 }
 0x139   : > { %v699_v18 = vpop.f32.mrf.mxu0 }
 0x13a   : > { %v700_v23 = vadd.f32 %v699_v18, %v3501_v25  ;;  %1093 = vmatprep.mubr.bf16.mxu1 %v853_v16  ;;  %v807_v31 = vmax.f32 %v698_v22, 0.0 }
 0x13b   : > { %v701_v27 = vpop.f32.mrf.mxu0  ;;  %1094 = vmatmul.mubr.bf16.gmra.mxu1 %v852_v17 }
 0x13c   : > { %v702_v28 = vadd.f32 %v701_v27, %v3497_v24  ;;  %v808_v29 = vmax.f32 %v700_v23, 0.0 }
 0x13d   : > { %v705_v30 = vpop.f32.mrf.mxu0 }
 0x13e   : > { %v809_v32 = vmax.f32 %v702_v28, 0.0  ;;  %v854_v36 = vpack.c.bf16 %v808_v29, %v806_v33  ;;  %v706_v40 = vadd.f32 %v705_v30, %v3501_v25 }
 0x13f   : > { %v707_v34 = vpop.f32.mrf.mxu0 }
 0x140   : > { %v855_v35 = vpack.c.bf16 %v809_v32, %v807_v31  ;;  %v708_v38 = vadd.f32 %v707_v34, %v3497_v24  ;;  %v810_v47 = vmax.f32 %v706_v40, 0.0  ;;  %v2945_v31 = vld [vmem:[%s4201_s6 + $0x10] ss:$8 sps:$4 sm:$0xff]   ;;  %v2947_v32 = vld [vmem:[%s4201_s6 + $0x14] ss:$8 sps:$4 sm:$0xff]  }
 0x141   : > { %v709_v37 = vpop.f32.mrf.mxu0  ;;  %1632 = vmatprep.subr.bf16.mxu0 %v2947_v32 }
 0x142   : > { %v710_v39 = vadd.f32 %v709_v37, %v3501_v25  ;;  %1101 = vmatprep.mubr.bf16.mxu1 %v855_v35  ;;  %v811_v45 = vmax.f32 %v708_v38, 0.0  ;;  %1633 = vmatpush1.bf16.msra.mxu0 %v2945_v31 }
 0x143   : > { %v711_v41 = vpop.f32.mrf.mxu0  ;;  %1102 = vmatmul.mubr.bf16.gmra.mxu1 %v854_v36 }
 0x144   : > { %v712_v42 = vadd.f32 %v711_v41, %v3497_v24  ;;  %v812_v43 = vmax.f32 %v710_v39, 0.0 }
 0x145   : > { %v715_v44 = vpop.f32.mrf.mxu0 }
 0x146   : > { %v813_v46 = vmax.f32 %v712_v42, 0.0  ;;  %v856_v50 = vpack.c.bf16 %v812_v43, %v810_v47  ;;  %v716_v54 = vadd.f32 %v715_v44, %v3501_v25 }
 0x147   : > { %v717_v48 = vpop.f32.mrf.mxu0 }
 0x148   : > { %v857_v49 = vpack.c.bf16 %v813_v46, %v811_v45  ;;  %v718_v52 = vadd.f32 %v717_v48, %v3497_v24  ;;  %v814_v61 = vmax.f32 %v716_v54, 0.0 }
 0x149   : > { %v719_v51 = vpop.f32.mrf.mxu0 }
 0x14a   : > { %v720_v53 = vadd.f32 %v719_v51, %v3501_v25  ;;  %1109 = vmatprep.mubr.bf16.mxu1 %v857_v49  ;;  %v815_v59 = vmax.f32 %v718_v52, 0.0 }
 0x14b   : > { %v721_v55 = vpop.f32.mrf.mxu0  ;;  %1110 = vmatmul.mubr.bf16.gmra.mxu1 %v856_v50 }
 0x14c   : > { %v722_v56 = vadd.f32 %v721_v55, %v3497_v24  ;;  %v816_v57 = vmax.f32 %v720_v53, 0.0 }
 0x14d   : > { %v725_v58 = vpop.f32.mrf.mxu0 }
 0x14e   : > { %v817_v60 = vmax.f32 %v722_v56, 0.0  ;;  %v858_v0 = vpack.c.bf16 %v816_v57, %v814_v61  ;;  %v726_v5 = vadd.f32 %v725_v58, %v3501_v25 }
 0x14f   : > { %v727_v62 = vpop.f32.mrf.mxu0 }
 0x150   : > { %v859_v63 = vpack.c.bf16 %v817_v60, %v815_v59  ;;  %v728_v3 = vadd.f32 %v727_v62, %v3497_v24  ;;  %v818_v12 = vmax.f32 %v726_v5, 0.0 }
 0x151   : > { %v729_v1 = vpop.f32.mrf.mxu0 }
 0x152   : > { %v730_v4 = vadd.f32 %v729_v1, %v3501_v25  ;;  %1117 = vmatprep.mubr.bf16.mxu1 %v859_v63  ;;  %v819_v10 = vmax.f32 %v728_v3, 0.0 }
 0x153   : > { %v731_v6 = vpop.f32.mrf.mxu0  ;;  %1118 = vmatmul.mubr.bf16.gmra.mxu1 %v858_v0 }
 0x154   : > { %v732_v7 = vadd.f32 %v731_v6, %v3497_v24  ;;  %v820_v8 = vmax.f32 %v730_v4, 0.0 }
 0x155   : > { %v735_v9 = vpop.f32.mrf.mxu0 }
 0x156   : > { %v821_v11 = vmax.f32 %v732_v7, 0.0  ;;  %v860_v15 = vpack.c.bf16 %v820_v8, %v818_v12  ;;  %v736_v22 = vadd.f32 %v735_v9, %v3501_v25 }
 0x157   : > { %v737_v13 = vpop.f32.mrf.mxu0 }
 0x158   : > { %v861_v14 = vpack.c.bf16 %v821_v11, %v819_v10  ;;  %v738_v17 = vadd.f32 %v737_v13, %v3497_v24  ;;  %v822_v33 = vmax.f32 %v736_v22, 0.0 }
 0x159   : > { %v739_v16 = vpop.f32.mrf.mxu0 }
 0x15a   : > { %v740_v18 = vadd.f32 %v739_v16, %v3501_v25  ;;  %1125 = vmatprep.mubr.bf16.mxu1 %v861_v14  ;;  %v823_v29 = vmax.f32 %v738_v17, 0.0  ;;  %v2948_v14 = vld [vmem:[%s4201_s6] ss:$8 sps:$4 sm:$0xff]  }
 0x15b   : > { %v741_v23 = vpop.f32.mrf.mxu0  ;;  %1126 = vmatmul.mubr.bf16.gmra.mxu1 %v860_v15  ;;  %v3582_v15 = vld [vmem:[%s4200_s5] ss:$0 sm:$0xff] }
 0x15c   : > { %v742_v26 = vadd.f32 %v741_v23, %v3497_v24  ;;  %v824_v27 = vmax.f32 %v740_v18, 0.0 }
 0x15d   : > { %v745_v28 = vpop.f32.mrf.mxu0 }
 0x15e   : > { %v825_v30 = vmax.f32 %v742_v26, 0.0  ;;  %v862_v36 = vpack.c.bf16 %v824_v27, %v822_v33  ;;  %v746_v40 = vadd.f32 %v745_v28, %v3501_v25 }
 0x15f   : > { %v747_v34 = vpop.f32.mrf.mxu0 }
 0x160   : > { %v863_v35 = vpack.c.bf16 %v825_v30, %v823_v29  ;;  %v748_v38 = vadd.f32 %v747_v34, %v3497_v24  ;;  %v826_v47 = vmax.f32 %v746_v40, 0.0 }
 0x161   : > { %v749_v37 = vpop.f32.mrf.mxu0 }
 0x162   : > { %v750_v39 = vadd.f32 %v749_v37, %v3501_v25  ;;  %1133 = vmatprep.mubr.bf16.mxu1 %v863_v35  ;;  %v827_v45 = vmax.f32 %v748_v38, 0.0 }
 0x163   : > { %v751_v41 = vpop.f32.mrf.mxu0  ;;  %1134 = vmatmul.mubr.bf16.gmra.mxu1 %v862_v36 }
 0x164   : > { %v752_v42 = vadd.f32 %v751_v41, %v3497_v24  ;;  %v828_v43 = vmax.f32 %v750_v39, 0.0 }
 0x165   : > { %v755_v44 = vpop.f32.mrf.mxu0 }
 0x166   : > { %v829_v46 = vmax.f32 %v752_v42, 0.0  ;;  %v864_v50 = vpack.c.bf16 %v828_v43, %v826_v47  ;;  %v756_v54 = vadd.f32 %v755_v44, %v3501_v25 }
 0x167   : > { %v757_v48 = vpop.f32.mrf.mxu0 }
 0x168   : > { %v865_v49 = vpack.c.bf16 %v829_v46, %v827_v45  ;;  %v758_v52 = vadd.f32 %v757_v48, %v3497_v24  ;;  %v830_v61 = vmax.f32 %v756_v54, 0.0 }
 0x169   : > { %v759_v51 = vpop.f32.mrf.mxu0 }
 0x16a   : > { %v760_v53 = vadd.f32 %v759_v51, %v3501_v25  ;;  %1141 = vmatprep.mubr.bf16.mxu1 %v865_v49  ;;  %v831_v59 = vmax.f32 %v758_v52, 0.0 }
 0x16b   : > { %v761_v55 = vpop.f32.mrf.mxu0  ;;  %1142 = vmatmul.mubr.bf16.gmra.mxu1 %v864_v50 }
 0x16c   : > { %v762_v56 = vadd.f32 %v761_v55, %v3497_v24  ;;  %v832_v57 = vmax.f32 %v760_v53, 0.0 }
 0x16d   : > { %v765_v58 = vpop.f32.mrf.mxu0 }
 0x16e   : > { %v833_v60 = vmax.f32 %v762_v56, 0.0  ;;  %v866_v0 = vpack.c.bf16 %v832_v57, %v830_v61  ;;  %v766_v5 = vadd.f32 %v765_v58, %v3501_v25 }
 0x16f   : > { %v767_v62 = vpop.f32.mrf.mxu0 }
 0x170   : > { %v867_v63 = vpack.c.bf16 %v833_v60, %v831_v59  ;;  %v768_v3 = vadd.f32 %v767_v62, %v3497_v24  ;;  %v834_v11 = vmax.f32 %v766_v5, 0.0 }
 0x171   : > { %v769_v1 = vpop.f32.mrf.mxu0 }
 0x172   : > { %v770_v4 = vadd.f32 %v769_v1, %v3501_v25  ;;  %1149 = vmatprep.mubr.bf16.mxu1 %v867_v63  ;;  %v835_v9 = vmax.f32 %v768_v3, 0.0  ;;  %v2950_v25 = vld [vmem:[%s4201_s6 + $0x4] ss:$8 sps:$4 sm:$0xff]  }
 0x173   : > { %v771_v6 = vpop.f32.mrf.mxu0  ;;  %1150 = vmatmul.mubr.bf16.gmra.mxu1 %v866_v0  ;;  %1634 = vmatprep.subr.bf16.mxu0 %v2950_v25 }
 0x174   : > { %v772_v7 = vadd.f32 %v771_v6, %v3497_v24  ;;  %v836_v8 = vmax.f32 %v770_v4, 0.0  ;;  %1635 = vmatpush1.bf16.msra.mxu0 %v2948_v14 }
 0x176   : > { %v837_v10 = vmax.f32 %v772_v7, 0.0  ;;  %v868_v13 = vpack.c.bf16 %v836_v8, %v834_v11 }
 0x178   : > { %v869_v12 = vpack.c.bf16 %v837_v10, %v835_v9 }
 0x17a   : > { %1157 = vmatprep.mubr.bf16.mxu1 %v869_v12 }
 0x17b   : > { %1158 = vmatmul.mubr.bf16.gmra.mxu1 %v868_v13 }
 0x1c3   : > { %v2654_v24 = vpop.f32.mrf.mxu1 }
 0x1c5   : > { %v2655_v16 = vpop.f32.mrf.mxu1 }
 0x1c6   : > { %v2656_v17 = vadd.f32 %v2655_v16, %v2654_v24 }
 0x1c7   : > { %v2657_v18 = vpop.f32.mrf.mxu1 }
 0x1c8   : > { %v3591_v22 = vadd.f32 %v2656_v17, %v3582_v15 }
 0x1c9   : > { %v2658_v23 = vpop.f32.mrf.mxu1 }
 0x1ca   : > { %1167 = vst.msk [vmem:[%s3588_s22] sm:$0xff] %vm1166_vm0, %v3591_v22  ;;  %v1199_v26 = vmul.f32 0.5, %v3591_v22  ;;  %v2659_v27 = vadd.f32 %v2658_v23, %v2657_v18 }
 0x1cb   : > { %v2660_v28 = vpop.f32.mrf.mxu1 }
 0x1cc   : > { %v1231_v29 = vmul.f32 1.442695, %v1199_v26  ;;  %v3598_v30 = vadd.f32 %v2659_v27, %v3582_v15 }
 0x1cd   : > { %v2661_v31 = vpop.f32.mrf.mxu1 }
 0x1ce   : > { %2967 = vpow2.f32 %v1231_v29  ;;  %1168 = vst.msk [vmem:[%s3588_s22 + $0x8] sm:$0xff] %vm1166_vm0, %v3598_v30  ;;  %v1200_v32 = vmul.f32 0.5, %v3598_v30  ;;  %v2662_v33 = vadd.f32 %v2661_v31, %v2660_v28 }
 0x1cf   : > { %v2663_v34 = vpop.f32.mrf.mxu1 }
 0x1d0   : > { %v1233_v35 = vmul.f32 1.442695, %v1200_v32  ;;  %v3605_v36 = vadd.f32 %v2662_v33, %v3582_v15 }
 0x1d1   : > { %v2664_v37 = vpop.f32.mrf.mxu1 }
 0x1d2   : > { %2969 = vpow2.f32 %v1233_v35  ;;  %1169 = vst.msk [vmem:[%s3588_s22 + $0x10] sm:$0xff] %vm1166_vm0, %v3605_v36  ;;  %v1201_v38 = vmul.f32 0.5, %v3605_v36  ;;  %v2665_v39 = vadd.f32 %v2664_v37, %v2663_v34 }
 0x1d3   : > { %v2666_v40 = vpop.f32.mrf.mxu1 }
 0x1d4   : > { %v1235_v41 = vmul.f32 1.442695, %v1201_v38  ;;  %v3612_v42 = vadd.f32 %v2665_v39, %v3582_v15 }
 0x1d5   : > { %v2667_v43 = vpop.f32.mrf.mxu1 }
 0x1d6   : > { %2971 = vpow2.f32 %v1235_v41  ;;  %1170 = vst.msk [vmem:[%s3588_s22 + $0x18] sm:$0xff] %vm1166_vm0, %v3612_v42  ;;  %v1202_v44 = vmul.f32 0.5, %v3612_v42  ;;  %v2668_v45 = vadd.f32 %v2667_v43, %v2666_v40 }
 0x1d7   : > { %v2669_v46 = vpop.f32.mrf.mxu1 }
 0x1d8   : > { %v1237_v47 = vmul.f32 1.442695, %v1202_v44  ;;  %v3619_v48 = vadd.f32 %v2668_v45, %v3582_v15 }
 0x1d9   : > { %v2670_v49 = vpop.f32.mrf.mxu1 }
 0x1da   : > { %2973 = vpow2.f32 %v1237_v47  ;;  %1171 = vst.msk [vmem:[%s3588_s22 + $0x20] sm:$0xff] %vm1166_vm0, %v3619_v48  ;;  %v1203_v50 = vmul.f32 0.5, %v3619_v48  ;;  %v2671_v51 = vadd.f32 %v2670_v49, %v2669_v46 }
 0x1db   : > { %v2968_v52 = vpop.eup %2967  ;;  %v2672_v53 = vpop.f32.mrf.mxu1 }
 0x1dc   : > { %v1239_v54 = vmul.f32 1.442695, %v1203_v50  ;;  %v3626_v55 = vadd.f32 %v2671_v51, %v3582_v15  ;;  %1359 = vrot.lane.b32.xlu0 %v2968_v52, %s3222_s14 }
 0x1dd   : > { %v2673_v56 = vpop.f32.mrf.mxu1 }
 0x1de   : > { %2975 = vpow2.f32 %v1239_v54  ;;  %1172 = vst.msk [vmem:[%s3588_s22 + $0x28] sm:$0xff] %vm1166_vm0, %v3626_v55  ;;  %v1204_v57 = vmul.f32 0.5, %v3626_v55  ;;  %v2674_v58 = vadd.f32 %v2673_v56, %v2672_v53 }
 0x1df   : > { %v2970_v59 = vpop.eup %2969  ;;  %v2675_v60 = vpop.f32.mrf.mxu1 }
 0x1e0   : > { %v1241_v61 = vmul.f32 1.442695, %v1204_v57  ;;  %v3634_v62 = vadd.f32 %v2674_v58, %v3582_v15  ;;  %1361 = vrot.lane.b32.xlu0 %v2970_v59, %s3222_s14 }
 0x1e1   : > { %v2676_v63 = vpop.f32.mrf.mxu1 }
 0x1e2   : > { %2977 = vpow2.f32 %v1241_v61  ;;  %1173 = vst.msk [vmem:[%s3588_s22 + $0x30] sm:$0xff] %vm1166_vm0, %v3634_v62  ;;  %v1205_v0 = vmul.f32 0.5, %v3634_v62  ;;  %v2677_v1 = vadd.f32 %v2676_v63, %v2675_v60 }
 0x1e3   : > { %v2972_v3 = vpop.eup %2971  ;;  %v2678_v4 = vpop.f32.mrf.mxu1 }
 0x1e4   : > { %v1243_v5 = vmul.f32 1.442695, %v1205_v0  ;;  %v3642_v6 = vadd.f32 %v2677_v1, %v3582_v15  ;;  %1363 = vrot.lane.b32.xlu1 %v2972_v3, %s3222_s14 }
 0x1e5   : > { %v2679_v7 = vpop.f32.mrf.mxu1 }
 0x1e6   : > { %2979 = vpow2.f32 %v1243_v5  ;;  %1174 = vst.msk [vmem:[%s3588_s22 + $0x38] sm:$0xff] %vm1166_vm0, %v3642_v6  ;;  %v1206_v8 = vmul.f32 0.5, %v3642_v6  ;;  %v2680_v9 = vadd.f32 %v2679_v7, %v2678_v4 }
 0x1e7   : > { %v2974_v10 = vpop.eup %2973  ;;  %v2681_v11 = vpop.f32.mrf.mxu1 }
 0x1e8   : > { %v1245_v12 = vmul.f32 1.442695, %v1206_v8  ;;  %v3650_v13 = vadd.f32 %v2680_v9, %v3582_v15  ;;  %1365 = vrot.lane.b32.xlu1 %v2974_v10, %s3222_s14 }
 0x1e9   : > { %v2682_v14 = vpop.f32.mrf.mxu1 }
 0x1ea   : > { %2981 = vpow2.f32 %v1245_v12  ;;  %1175 = vst.msk [vmem:[%s3588_s22 + $0x40] sm:$0xff] %vm1166_vm0, %v3650_v13  ;;  %v1207_v25 = vmul.f32 0.5, %v3650_v13  ;;  %v2683_v24 = vadd.f32 %v2682_v14, %v2681_v11 }
 0x1eb   : > { %v2976_v16 = vpop.eup %2975  ;;  %v2684_v17 = vpop.f32.mrf.mxu1 }
 0x1ec   : > { %v1247_v18 = vmul.f32 1.442695, %v1207_v25  ;;  %v3658_v23 = vadd.f32 %v2683_v24, %v3582_v15  ;;  %1367 = vrot.lane.b32.xlu0 %v2976_v16, %s3222_s14 }
 0x1ed   : > { %v2685_v26 = vpop.f32.mrf.mxu1 }
 0x1ee   : > { %2983 = vpow2.f32 %v1247_v18  ;;  %1176 = vst.msk [vmem:[%s3588_s22 + $0x48] sm:$0xff] %vm1166_vm0, %v3658_v23  ;;  %v1208_v27 = vmul.f32 0.5, %v3658_v23  ;;  %v2686_v28 = vadd.f32 %v2685_v26, %v2684_v17 }
 0x1ef   : > { %v2978_v29 = vpop.eup %2977  ;;  %v2687_v31 = vpop.f32.mrf.mxu1 }
 0x1f0   : > { %v1249_v32 = vmul.f32 1.442695, %v1208_v27  ;;  %v3666_v33 = vadd.f32 %v2686_v28, %v3582_v15  ;;  %1369 = vrot.lane.b32.xlu1 %v2978_v29, %s3222_s14 }
 0x1f1   : > { %v2688_v34 = vpop.f32.mrf.mxu1 }
 0x1f2   : > { %2985 = vpow2.f32 %v1249_v32  ;;  %1177 = vst.msk [vmem:[%s3588_s22 + $0x50] sm:$0xff] %vm1166_vm0, %v3666_v33  ;;  %v1209_v35 = vmul.f32 0.5, %v3666_v33  ;;  %v2689_v37 = vadd.f32 %v2688_v34, %v2687_v31 }
 0x1f3   : > { %v2980_v38 = vpop.eup %2979  ;;  %v2690_v39 = vpop.f32.mrf.mxu1 }
 0x1f4   : > { %v1251_v40 = vmul.f32 1.442695, %v1209_v35  ;;  %v3674_v41 = vadd.f32 %v2689_v37, %v3582_v15  ;;  %1371 = vrot.lane.b32.xlu0 %v2980_v38, %s3222_s14 }
 0x1f5   : > { %v2691_v43 = vpop.f32.mrf.mxu1 }
 0x1f6   : > { %2987 = vpow2.f32 %v1251_v40  ;;  %1178 = vst.msk [vmem:[%s3588_s22 + $0x58] sm:$0xff] %vm1166_vm0, %v3674_v41  ;;  %v1210_v44 = vmul.f32 0.5, %v3674_v41  ;;  %v2692_v45 = vadd.f32 %v2691_v43, %v2690_v39 }
 0x1f7   : > { %v2982_v46 = vpop.eup %2981  ;;  %v2693_v47 = vpop.f32.mrf.mxu1 }
 0x1f8   : > { %v1253_v49 = vmul.f32 1.442695, %v1210_v44  ;;  %v3682_v50 = vadd.f32 %v2692_v45, %v3582_v15  ;;  %1373 = vrot.lane.b32.xlu1 %v2982_v46, %s3222_s14 }
 0x1f9   : > { %v2694_v51 = vpop.f32.mrf.mxu1 }
 0x1fa   : > { %2989 = vpow2.f32 %v1253_v49  ;;  %1179 = vst.msk [vmem:[%s3588_s22 + $0x60] sm:$0xff] %vm1166_vm0, %v3682_v50  ;;  %v1211_v52 = vmul.f32 0.5, %v3682_v50  ;;  %v2695_v53 = vadd.f32 %v2694_v51, %v2693_v47 }
 0x1fb   : > { %v2984_v54 = vpop.eup %2983  ;;  %v2696_v56 = vpop.f32.mrf.mxu1 }
 0x1fc   : > { %v1255_v57 = vmul.f32 1.442695, %v1211_v52  ;;  %v3690_v58 = vadd.f32 %v2695_v53, %v3582_v15  ;;  %1375 = vrot.lane.b32.xlu0 %v2984_v54, %s3222_s14 }
 0x1fd   : > { %v2697_v59 = vpop.f32.mrf.mxu1 }
 0x1fe   : > { %2991 = vpow2.f32 %v1255_v57  ;;  %1180 = vst.msk [vmem:[%s3588_s22 + $0x68] sm:$0xff] %vm1166_vm0, %v3690_v58  ;;  %v1212_v60 = vmul.f32 0.5, %v3690_v58  ;;  %v2698_v61 = vadd.f32 %v2697_v59, %v2696_v56 }
 0x1ff   : > { %v2986_v63 = vpop.eup %2985  ;;  %v2699_v0 = vpop.f32.mrf.mxu1 }
 0x200   : > { %v1257_v1 = vmul.f32 1.442695, %v1212_v60  ;;  %v3698_v3 = vadd.f32 %v2698_v61, %v3582_v15  ;;  %1377 = vrot.lane.b32.xlu1 %v2986_v63, %s3222_s14 }
 0x201   : > { %v2700_v4 = vpop.f32.mrf.mxu1 }
 0x202   : > { %2993 = vpow2.f32 %v1257_v1  ;;  %1181 = vst.msk [vmem:[%s3588_s22 + $0x70] sm:$0xff] %vm1166_vm0, %v3698_v3  ;;  %v1213_v5 = vmul.f32 0.5, %v3698_v3  ;;  %v2701_v7 = vadd.f32 %v2700_v4, %v2699_v0 }
 0x203   : > { %v2988_v8 = vpop.eup %2987  ;;  %v2702_v9 = vpop.f32.mrf.mxu1 }
 0x204   : > { %v1259_v10 = vmul.f32 1.442695, %v1213_v5  ;;  %v3706_v11 = vadd.f32 %v2701_v7, %v3582_v15  ;;  %1379 = vrot.lane.b32.xlu0 %v2988_v8, %s3222_s14 }
 0x205   : > { %v2703_v12 = vpop.f32.mrf.mxu1 }
 0x206   : > { %2995 = vpow2.f32 %v1259_v10  ;;  %1182 = vst.msk [vmem:[%s3588_s22 + $0x78] sm:$0xff] %vm1166_vm0, %v3706_v11  ;;  %v1214_v14 = vmul.f32 0.5, %v3706_v11  ;;  %v2704_v25 = vadd.f32 %v2703_v12, %v2702_v9 }
 0x207   : > { %v2990_v24 = vpop.eup %2989  ;;  %v2705_v16 = vpop.f32.mrf.mxu1 }
 0x208   : > { %v1261_v17 = vmul.f32 1.442695, %v1214_v14  ;;  %v3714_v18 = vadd.f32 %v2704_v25, %v3582_v15  ;;  %1381 = vrot.lane.b32.xlu1 %v2990_v24, %s3222_s14 }
 0x209   : > { %v2706_v26 = vpop.f32.mrf.mxu1 }
 0x20a   : > { %2997 = vpow2.f32 %v1261_v17  ;;  %1183 = vst.msk [vmem:[%s3588_s22 + $0x80] sm:$0xff] %vm1166_vm0, %v3714_v18  ;;  %v1215_v27 = vmul.f32 0.5, %v3714_v18  ;;  %v2707_v28 = vadd.f32 %v2706_v26, %v2705_v16 }
 0x20b   : > { %v2992_v29 = vpop.eup %2991  ;;  %v2708_v31 = vpop.f32.mrf.mxu1 }
 0x20c   : > { %v1263_v32 = vmul.f32 1.442695, %v1215_v27  ;;  %v3722_v34 = vadd.f32 %v2707_v28, %v3582_v15  ;;  %1383 = vrot.lane.b32.xlu0 %v2992_v29, %s3222_s14 }
 0x20d   : > { %v2709_v35 = vpop.f32.mrf.mxu1 }
 0x20e   : > { %2999 = vpow2.f32 %v1263_v32  ;;  %1184 = vst.msk [vmem:[%s3588_s22 + $0x88] sm:$0xff] %vm1166_vm0, %v3722_v34  ;;  %v1216_v37 = vmul.f32 0.5, %v3722_v34  ;;  %v2710_v38 = vadd.f32 %v2709_v35, %v2708_v31 }
 0x20f   : > { %v2994_v39 = vpop.eup %2993  ;;  %v2711_v40 = vpop.f32.mrf.mxu1 }
 0x210   : > { %v1265_v43 = vmul.f32 1.442695, %v1216_v37  ;;  %v3730_v44 = vadd.f32 %v2710_v38, %v3582_v15  ;;  %1385 = vrot.lane.b32.xlu1 %v2994_v39, %s3222_s14 }
 0x211   : > { %v2712_v45 = vpop.f32.mrf.mxu1 }
 0x212   : > { %3001 = vpow2.f32 %v1265_v43  ;;  %1185 = vst.msk [vmem:[%s3588_s22 + $0x90] sm:$0xff] %vm1166_vm0, %v3730_v44  ;;  %v1217_v46 = vmul.f32 0.5, %v3730_v44  ;;  %v2713_v47 = vadd.f32 %v2712_v45, %v2711_v40  ;;  %v2951_v45 = vld [vmem:[%s4203_s8 + $0x78] sm:$0xff]  }
 0x213   : > { %v2996_v49 = vpop.eup %2995  ;;  %v2714_v51 = vpop.f32.mrf.mxu1  ;;  %2750 = vmatprep.subr.bf16.mxu1 %v2951_v45 }
 0x214   : > { %v1267_v52 = vmul.f32 1.442695, %v1217_v46  ;;  %v3738_v53 = vadd.f32 %v2713_v47, %v3582_v15  ;;  %1387 = vrot.lane.b32.xlu0 %v2996_v49, %s3222_s14 }
 0x215   : > { %v2715_v54 = vpop.f32.mrf.mxu1 }
 0x216   : > { %3003 = vpow2.f32 %v1267_v52  ;;  %1186 = vst.msk [vmem:[%s3588_s22 + $0x98] sm:$0xff] %vm1166_vm0, %v3738_v53  ;;  %v1218_v56 = vmul.f32 0.5, %v3738_v53  ;;  %v2716_v57 = vadd.f32 %v2715_v54, %v2714_v51  ;;  %v2952_v51 = vld [vmem:[%s4203_s8 + $0x38] sm:$0xff]  }
 0x217   : > { %v2998_v59 = vpop.eup %2997  ;;  %v2717_v60 = vpop.f32.mrf.mxu1  ;;  %2751 = vmatpush3.bf16.msra.mxu1 %v2952_v51 }
 0x218   : > { %v1269_v61 = vmul.f32 1.442695, %v1218_v56  ;;  %v3746_v63 = vadd.f32 %v2716_v57, %v3582_v15  ;;  %1389 = vrot.lane.b32.xlu1 %v2998_v59, %s3222_s14 }
 0x219   : > { %v2718_v0 = vpop.f32.mrf.mxu1 }
 0x21a   : > { %3005 = vpow2.f32 %v1269_v61  ;;  %1187 = vst.msk [vmem:[%s3588_s22 + $0xa0] sm:$0xff] %vm1166_vm0, %v3746_v63  ;;  %v1219_v1 = vmul.f32 0.5, %v3746_v63  ;;  %v2719_v4 = vadd.f32 %v2718_v0, %v2717_v60 }
 0x21b   : > { %v3000_v5 = vpop.eup %2999  ;;  %v2720_v7 = vpop.f32.mrf.mxu1 }
 0x21c   : > { %v1271_v8 = vmul.f32 1.442695, %v1219_v1  ;;  %v3754_v9 = vadd.f32 %v2719_v4, %v3582_v15  ;;  %1391 = vrot.lane.b32.xlu0 %v3000_v5, %s3222_s14 }
 0x21d   : > { %v2721_v10 = vpop.f32.mrf.mxu1 }
 0x21e   : > { %3007 = vpow2.f32 %v1271_v8  ;;  %1188 = vst.msk [vmem:[%s3588_s22 + $0xa8] sm:$0xff] %vm1166_vm0, %v3754_v9  ;;  %v1220_v12 = vmul.f32 0.5, %v3754_v9  ;;  %v2722_v14 = vadd.f32 %v2721_v10, %v2720_v7 }
 0x21f   : > { %v3002_v25 = vpop.eup %3001  ;;  %v2723_v24 = vpop.f32.mrf.mxu1 }
 0x220   : > { %v1273_v16 = vmul.f32 1.442695, %v1220_v12  ;;  %v3762_v17 = vadd.f32 %v2722_v14, %v3582_v15  ;;  %1393 = vrot.lane.b32.xlu1 %v3002_v25, %s3222_s14 }
 0x221   : > { %v2724_v26 = vpop.f32.mrf.mxu1 }
 0x222   : > { %3009 = vpow2.f32 %v1273_v16  ;;  %1189 = vst.msk [vmem:[%s3588_s22 + $0xb0] sm:$0xff] %vm1166_vm0, %v3762_v17  ;;  %v1221_v27 = vmul.f32 0.5, %v3762_v17  ;;  %v2725_v28 = vadd.f32 %v2724_v26, %v2723_v24 }
 0x223   : > { %v3004_v29 = vpop.eup %3003  ;;  %v2726_v31 = vpop.f32.mrf.mxu1 }
 0x224   : > { %v1275_v32 = vmul.f32 1.442695, %v1221_v27  ;;  %v3770_v35 = vadd.f32 %v2725_v28, %v3582_v15  ;;  %1395 = vrot.lane.b32.xlu0 %v3004_v29, %s3222_s14 }
 0x225   : > { %v2727_v37 = vpop.f32.mrf.mxu1 }
 0x226   : > { %3011 = vpow2.f32 %v1275_v32  ;;  %1190 = vst.msk [vmem:[%s3588_s22 + $0xb8] sm:$0xff] %vm1166_vm0, %v3770_v35  ;;  %v1222_v38 = vmul.f32 0.5, %v3770_v35  ;;  %v2728_v39 = vadd.f32 %v2727_v37, %v2726_v31  ;;  %v2953_v37 = vld [vmem:[%s4203_s8 + $0x70] sm:$0xff]  }
 0x227   : > { %v3006_v40 = vpop.eup %3005  ;;  %v2729_v43 = vpop.f32.mrf.mxu1  ;;  %2752 = vmatprep.subr.bf16.mxu1 %v2953_v37 }
 0x228   : > { %v1277_v46 = vmul.f32 1.442695, %v1222_v38  ;;  %v3781_v47 = vadd.f32 %v2728_v39, %v3582_v15  ;;  %1397 = vrot.lane.b32.xlu1 %v3006_v40, %s3222_s14 }
 0x229   : > { %v2730_v49 = vpop.f32.mrf.mxu1 }
 0x22a   : > { %3013 = vpow2.f32 %v1277_v46  ;;  %1191 = vst.msk [vmem:[%s3588_s22 + $0xc0] sm:$0xff] %vm1166_vm0, %v3781_v47  ;;  %v1223_v52 = vmul.f32 0.5, %v3781_v47  ;;  %v2731_v54 = vadd.f32 %v2730_v49, %v2729_v43  ;;  %v2954_v43 = vld [vmem:[%s4203_s8 + $0x30] sm:$0xff]  }
 0x22b   : > { %v3008_v56 = vpop.eup %3007  ;;  %v2732_v57 = vpop.f32.mrf.mxu1  ;;  %2753 = vmatpush3.bf16.msra.mxu1 %v2954_v43  ;;  %v2957_v43 = vld [vmem:[%s4203_s8 + $0x60] sm:$0xff]  }
 0x22c   : > { %v1279_v59 = vmul.f32 1.442695, %v1223_v52  ;;  %v3792_v60 = vadd.f32 %v2731_v54, %v3582_v15  ;;  %1399 = vrot.lane.b32.xlu0 %v3008_v56, %s3222_s14 }
 0x22d   : > { %v2733_v61 = vpop.f32.mrf.mxu1 }
 0x22e   : > { %3015 = vpow2.f32 %v1279_v59  ;;  %1192 = vst.msk [vmem:[%s3588_s22 + $0xc8] sm:$0xff] %vm1166_vm0, %v3792_v60  ;;  %v1224_v0 = vmul.f32 0.5, %v3792_v60  ;;  %v2734_v1 = vadd.f32 %v2733_v61, %v2732_v57 }
 0x22f   : > { %v3010_v4 = vpop.eup %3009  ;;  %v2735_v5 = vpop.f32.mrf.mxu1 }
 0x230   : > { %v1281_v7 = vmul.f32 1.442695, %v1224_v0  ;;  %v3800_v8 = vadd.f32 %v2734_v1, %v3582_v15  ;;  %1401 = vrot.lane.b32.xlu1 %v3010_v4, %s3222_s14 }
 0x231   : > { %v2736_v10 = vpop.f32.mrf.mxu1 }
 0x232   : > { %3017 = vpow2.f32 %v1281_v7  ;;  %1193 = vst.msk [vmem:[%s3588_s22 + $0xd0] sm:$0xff] %vm1166_vm0, %v3800_v8  ;;  %v1225_v12 = vmul.f32 0.5, %v3800_v8  ;;  %v2737_v14 = vadd.f32 %v2736_v10, %v2735_v5 }
 0x233   : > { %v3012_v25 = vpop.eup %3011  ;;  %v2738_v24 = vpop.f32.mrf.mxu1 }
 0x234   : > { %v1283_v16 = vmul.f32 1.442695, %v1225_v12  ;;  %v3808_v26 = vadd.f32 %v2737_v14, %v3582_v15  ;;  %1403 = vrot.lane.b32.xlu0 %v3012_v25, %s3222_s14 }
 0x235   : > { %v2739_v27 = vpop.f32.mrf.mxu1 }
 0x236   : > { %3019 = vpow2.f32 %v1283_v16  ;;  %1194 = vst.msk [vmem:[%s3588_s22 + $0xd8] sm:$0xff] %vm1166_vm0, %v3808_v26  ;;  %v1226_v28 = vmul.f32 0.5, %v3808_v26  ;;  %v2740_v29 = vadd.f32 %v2739_v27, %v2738_v24  ;;  %v2955_v27 = vld [vmem:[%s4203_s8 + $0x68] sm:$0xff]  }
 0x237   : > { %v3014_v31 = vpop.eup %3013  ;;  %v2741_v32 = vpop.f32.mrf.mxu1  ;;  %2754 = vmatprep.subr.bf16.mxu1 %v2955_v27 }
 0x238   : > { %v1285_v38 = vmul.f32 1.442695, %v1226_v28  ;;  %v3819_v39 = vadd.f32 %v2740_v29, %v3582_v15  ;;  %1405 = vrot.lane.b32.xlu1 %v3014_v31, %s3222_s14 }
 0x239   : > { %v2742_v40 = vpop.f32.mrf.mxu1 }
 0x23a   : > { %3021 = vpow2.f32 %v1285_v38  ;;  %1195 = vst.msk [vmem:[%s3588_s22 + $0xe0] sm:$0xff] %vm1166_vm0, %v3819_v39  ;;  %v1227_v45 = vmul.f32 0.5, %v3819_v39  ;;  %v2743_v46 = vadd.f32 %v2742_v40, %v2741_v32 }
 0x23b   : > { %v3016_v49 = vpop.eup %3015  ;;  %v2744_v51 = vpop.f32.mrf.mxu1 }
 0x23c   : > { %v1287_v52 = vmul.f32 1.442695, %v1227_v45  ;;  %v3830_v54 = vadd.f32 %v2743_v46, %v3582_v15  ;;  %1407 = vrot.lane.b32.xlu0 %v3016_v49, %s3222_s14  ;;  %v2958_v45 = vld [vmem:[%s4203_s8 + $0x20] sm:$0xff]   ;;  %v2959_v46 = vld [vmem:[%s4203_s8 + $0x58] sm:$0xff]  }
 0x23d   : > { %v2745_v56 = vpop.f32.mrf.mxu1 }
 0x23e   : > { %3023 = vpow2.f32 %v1287_v52  ;;  %1196 = vst.msk [vmem:[%s3588_s22 + $0xe8] sm:$0xff] %vm1166_vm0, %v3830_v54  ;;  %v1228_v57 = vmul.f32 0.5, %v3830_v54  ;;  %v2746_v59 = vadd.f32 %v2745_v56, %v2744_v51  ;;  %v2960_v56 = vld [vmem:[%s4203_s8 + $0x18] sm:$0xff]  }
 0x23f   : > { %v3018_v61 = vpop.eup %3017  ;;  %v2747_v0 = vpop.f32.mrf.mxu1 }
 0x240   : > { %v1289_v1 = vmul.f32 1.442695, %v1228_v57  ;;  %v3838_v4 = vadd.f32 %v2746_v59, %v3582_v15  ;;  %1409 = vrot.lane.b32.xlu1 %v3018_v61, %s3222_s14  ;;  %v2961_v61 = vld [vmem:[%s4203_s8 + $0x50] sm:$0xff]  }
 0x241   : > { %v2748_v5 = vpop.f32.mrf.mxu1 }
 0x242   : > { %3025 = vpow2.f32 %v1289_v1  ;;  %1197 = vst.msk [vmem:[%s3588_s22 + $0xf0] sm:$0xff] %vm1166_vm0, %v3838_v4  ;;  %v1229_v7 = vmul.f32 0.5, %v3838_v4  ;;  %v2749_v10 = vadd.f32 %v2748_v5, %v2747_v0 }
 0x243   : > { %v3020_v12 = vpop.eup %3019 }
 0x244   : > { %v1291_v14 = vmul.f32 1.442695, %v1229_v7  ;;  %v3846_v25 = vadd.f32 %v2749_v10, %v3582_v15  ;;  %1411 = vrot.lane.b32.xlu0 %v3020_v12, %s3222_s14  ;;  %v2956_v15 = vld [vmem:[%s4203_s8 + $0x28] sm:$0xff]  }
 0x245   : > { %2755 = vmatpush3.bf16.msra.mxu1 %v2956_v15  ;;  %v2963_v12 = vld [vmem:[%s4203_s8 + $0x48] sm:$0xff]   ;;  %v2965_v15 = vld [vmem:[%s4203_s8 + $0x40] sm:$0xff]  }
 0x246   : > { %3027 = vpow2.f32 %v1291_v14  ;;  %1198 = vst.msk [vmem:[%s3588_s22 + $0xf8] sm:$0xff] %vm1166_vm0, %v3846_v25  ;;  %v1230_v24 = vmul.f32 0.5, %v3846_v25  ;;  %s3864_s22 = scalar_lea.vmem %s4196_s1, %s3375_s24  ;;  %2756 = vmatprep.subr.bf16.mxu1 %v2957_v43  ;;  %s3163_s24 = sshll.u32 %s3223_s21, 4  ;;  %s3164_s24 = int_to_ptr.vmem [resolvable:$false] %s3163_s24 }
 0x247   : > { %v3022_v16 = vpop.eup %3021  ;;  %v1295_v31 = vld [vmem:[%s3864_s22] sm:$0xff]  ;;  %v1296_v38 = vld [vmem:[%s3864_s22 + $0x8] sm:$0xff]  ;;  %v1297_v0 = vld [vmem:[%s3864_s22 + $0x10] sm:$0xff] }
 0x248   : > { %v1293_v28 = vmul.f32 1.442695, %v1230_v24  ;;  %1413 = vrot.lane.b32.xlu1 %v3022_v16, %s3222_s14  ;;  %v1298_v10 = vld [vmem:[%s3864_s22 + $0x18] sm:$0xff]  ;;  %v2964_v16 = vld [vmem:[%s4203_s8 + $0x8] sm:$0xff]  }
 0x249   : > { %2757 = vmatpush3.bf16.msra.mxu1 %v2958_v45 }
 0x24a   : > { %3029 = vpow2.f32 %v1293_v28  ;;  %2758 = vmatprep.subr.bf16.mxu1 %v2959_v46  ;;  %v1301_v46 = vld [vmem:[%s3864_s22 + $0x30] sm:$0xff] }
 0x24b   : > { %v3024_v29 = vpop.eup %3023 }
 0x24c   : > { %1415 = vrot.lane.b32.xlu0 %v3024_v29, %s3222_s14  ;;  %v1299_v29 = vld [vmem:[%s3864_s22 + $0x20] sm:$0xff] }
 0x24d   : > { %2759 = vmatpush3.bf16.msra.mxu1 %v2960_v56 }
 0x24e   : > { %v1360_v32 = vpop.permute.xlu0 %1359  ;;  %2760 = vmatprep.subr.bf16.mxu1 %v2961_v61 }
 0x24f   : > { %v3026_v37 = vpop.eup %3025  ;;  %v1455_v40 = vmul.f32 %v1360_v32, %v1295_v31 }
 0x250   : > { %1417 = vrot.lane.b32.xlu1 %v3026_v37, %s3222_s14  ;;  %v1300_v37 = vld [vmem:[%s3864_s22 + $0x28] sm:$0xff] }
 0x251   : > { %v1487_v57 = vadd.f32 %v1455_v40, %v3591_v22  ;;  %v2962_v22 = vld [vmem:[%s4203_s8 + $0x10] sm:$0xff]  }
 0x252   : > { %v1362_v49 = vpop.permute.xlu0 %1361  ;;  %2761 = vmatpush3.bf16.msra.mxu1 %v2962_v22 }
 0x253   : > { %v3028_v51 = vpop.eup %3027  ;;  %v1456_v52 = vmul.f32 %v1362_v49, %v1296_v38  ;;  %2762 = vmatprep.subr.bf16.mxu1 %v2963_v12  ;;  %v2966_v38 = vld [vmem:[%s4203_s8] sm:$0xff]   ;;  %v1305_v12 = vld [vmem:[%s3864_s22 + $0x50] sm:$0xff] }
 0x254   : > { %1419 = vrot.lane.b32.xlu0 %v3028_v51, %s3222_s14 }
 0x255   : > { %v1488_v59 = vadd.f32 %v1456_v52, %v3598_v30  ;;  %v1302_v52 = vld [vmem:[%s3864_s22 + $0x38] sm:$0xff] }
 0x256   : > { %v1364_v1 = vpop.permute.xlu1 %1363  ;;  %2763 = vmatpush3.bf16.msra.mxu1 %v2964_v16 }
 0x257   : > { %v3030_v5 = vpop.eup %3029  ;;  %v1519_v7 = vpack.c.bf16 %v1488_v59, %v1487_v57  ;;  %v1457_v30 = vmul.f32 %v1364_v1, %v1297_v0  ;;  %2764 = vmatprep.subr.bf16.mxu1 %v2965_v15  ;;  %v1303_v0 = vld [vmem:[%s3864_s22 + $0x40] sm:$0xff] }
 0x258   : > { %1421 = vrot.lane.b32.xlu1 %v3030_v5, %s3222_s14  ;;  %v1304_v5 = vld [vmem:[%s3864_s22 + $0x48] sm:$0xff]  ;;  %s2555_s14 = sshll.u32 %s395_s29, 8 }
 0x259   : > { %2599 = vmatmul.mubr.msk.bf16.vlgmr.msra.gmra.mxu0 %vm1571_vm1, %v1519_v7  ;;  %v1489_v27 = vadd.f32 %v1457_v30, %v3605_v36  ;;  %s4087_s30 = scalar_lea.vmem [#allocation2], %s2555_s14  ;;  %s3165_s14 = scalar_lea.vmem %s3164_s24, 8192 }
 0x25a   : > { %v1366_v14 = vpop.permute.xlu1 %1365  ;;  %1662 = vmatprep.mubr.bf16.mxu0 %v3221_v2  ;;  %2765 = vmatpush3.bf16.msra.mxu1 %v2966_v38  ;;  %s2448_s13 = sshll.u32 %s4087_s30, 4  ;;  %s4150_s13 = int_to_ptr.vmem [resolvable:$true] %s2448_s13 }
 0x25b   : > { %v1458_v24 = vmul.f32 %v1366_v14, %v1298_v10  ;;  %p3166_p0 = scmp.lt.s32.totalorder %s4150_s13, %s3164_s24 }
 0x25d   : > { %v1490_v28 = vadd.f32 %v1458_v24, %v3612_v42  ;;  %v1306_v24 = vld [vmem:[%s3864_s22 + $0x58] sm:$0xff] }
 0x25e   : > { %v1368_v31 = vpop.permute.xlu0 %1367 }
 0x25f   : > { %v1520_v32 = vpack.c.bf16 %v1490_v28, %v1489_v27  ;;  %v1459_v40 = vmul.f32 %v1368_v31, %v1299_v29  ;;  %v1307_v29 = vld [vmem:[%s3864_s22 + $0x60] sm:$0xff] }
 0x261   : > { %2600 = vmatmul.mubr.msk.bf16.gmra.mxu0 %vm1571_vm1, %v1520_v32  ;;  %v1491_v43 = vadd.f32 %v1459_v40, %v3619_v48  ;;  %v1308_v32 = vld [vmem:[%s3864_s22 + $0x68] sm:$0xff] }
 0x262   : > { %v1370_v36 = vpop.permute.xlu1 %1369  ;;  %1672 = vmatprep.mubr.bf16.mxu0 %v3221_v2 }
 0x263   : > { %v1460_v42 = vmul.f32 %v1370_v36, %v1300_v37 }
 0x265   : > { %v1492_v45 = vadd.f32 %v1460_v42, %v3626_v55  ;;  %v1309_v42 = vld [vmem:[%s3864_s22 + $0x70] sm:$0xff] }
 0x266   : > { %v1372_v49 = vpop.permute.xlu0 %1371 }
 0x267   : > { %v1521_v51 = vpack.c.bf16 %v1492_v45, %v1491_v43  ;;  %v1461_v56 = vmul.f32 %v1372_v49, %v1301_v46  ;;  %v1310_v45 = vld [vmem:[%s3864_s22 + $0x78] sm:$0xff] }
 0x269   : > { %2601 = vmatmul.mubr.msk.bf16.gmra.mxu0 %vm1571_vm1, %v1521_v51  ;;  %v1493_v61 = vadd.f32 %v1461_v56, %v3634_v62  ;;  %v1311_v56 = vld [vmem:[%s3864_s22 + $0x80] sm:$0xff] }
 0x26a   : > { %v1374_v57 = vpop.permute.xlu1 %1373  ;;  %1682 = vmatprep.mubr.bf16.mxu0 %v3221_v2 }
 0x26b   : > { %v1462_v59 = vmul.f32 %v1374_v57, %v1302_v52 }
 0x26d   : > { %v1494_v48 = vadd.f32 %v1462_v59, %v3642_v6  ;;  %v1312_v59 = vld [vmem:[%s3864_s22 + $0x88] sm:$0xff] }
 0x26e   : > { %v1376_v1 = vpop.permute.xlu0 %1375 }
 0x26f   : > { %v1522_v55 = vpack.c.bf16 %v1494_v48, %v1493_v61  ;;  %v1463_v7 = vmul.f32 %v1376_v1, %v1303_v0 }
 0x271   : > { %2602 = vmatmul.mubr.msk.bf16.gmra.mxu0 %vm1571_vm1, %v1522_v55  ;;  %v1495_v30 = vadd.f32 %v1463_v7, %v3650_v13  ;;  %v1313_v55 = vld [vmem:[%s3864_s22 + $0x90] sm:$0xff]  ;;  %v1314_v7 = vld [vmem:[%s3864_s22 + $0x98] sm:$0xff] }
 0x272   : > { %v1378_v10 = vpop.permute.xlu1 %1377  ;;  %1692 = vmatprep.mubr.bf16.mxu0 %v3221_v2 }
 0x273   : > { %v1464_v22 = vmul.f32 %v1378_v10, %v1304_v5 }
 0x275   : > { %v1496_v62 = vadd.f32 %v1464_v22, %v3658_v23 }
 0x276   : > { %v1380_v14 = vpop.permute.xlu0 %1379 }
 0x277   : > { %v1523_v6 = vpack.c.bf16 %v1496_v62, %v1495_v30  ;;  %v1465_v16 = vmul.f32 %v1380_v14, %v1305_v12  ;;  %v1315_v12 = vld [vmem:[%s3864_s22 + $0xa0] sm:$0xff] }
 0x279   : > { %2603 = vmatmul.mubr.msk.bf16.gmra.mxu0 %vm1571_vm1, %v1523_v6  ;;  %v1497_v15 = vadd.f32 %v1465_v16, %v3666_v33  ;;  %v1316_v6 = vld [vmem:[%s3864_s22 + $0xa8] sm:$0xff] }
 0x27a   : > { %v1382_v27 = vpop.permute.xlu1 %1381  ;;  %1702 = vmatprep.mubr.bf16.mxu0 %v3221_v2 }
 0x27b   : > { %v1466_v28 = vmul.f32 %v1382_v27, %v1306_v24 }
 0x27d   : > { %v1498_v13 = vadd.f32 %v1466_v28, %v3674_v41 }
 0x27e   : > { %v1384_v31 = vpop.permute.xlu0 %1383 }
 0x27f   : > { %v1524_v23 = vpack.c.bf16 %v1498_v13, %v1497_v15  ;;  %v1467_v37 = vmul.f32 %v1384_v31, %v1307_v29  ;;  %v1317_v15 = vld [vmem:[%s3864_s22 + $0xb0] sm:$0xff]  ;;  %v1318_v29 = vld [vmem:[%s3864_s22 + $0xb8] sm:$0xff] }
 0x281   : > { %2604 = vmatmul.mubr.msk.bf16.gmra.mxu0 %vm1571_vm1, %v1524_v23  ;;  %v1499_v36 = vadd.f32 %v1467_v37, %v3682_v50 }
 0x282   : > { %v1386_v38 = vpop.permute.xlu1 %1385  ;;  %1712 = vmatprep.mubr.bf16.mxu0 %v3221_v2 }
 0x283   : > { %v1468_v40 = vmul.f32 %v1386_v38, %v1308_v32  ;;  %v1319_v38 = vld [vmem:[%s3864_s22 + $0xc0] sm:$0xff] }
 0x285   : > { %v1500_v33 = vadd.f32 %v1468_v40, %v3690_v58 }
 0x286   : > { %v1388_v43 = vpop.permute.xlu0 %1387 }
 0x287   : > { %v1525_v41 = vpack.c.bf16 %v1500_v33, %v1499_v36  ;;  %v1469_v46 = vmul.f32 %v1388_v43, %v1309_v42  ;;  %v1320_v36 = vld [vmem:[%s3864_s22 + $0xc8] sm:$0xff] }
 0x289   : > { %2605 = vmatmul.mubr.msk.bf16.gmra.mxu0 %vm1571_vm1, %v1525_v41  ;;  %v1501_v52 = vadd.f32 %v1469_v46, %v3698_v3 }
 0x28a   : > { %v1390_v49 = vpop.permute.xlu1 %1389  ;;  %1722 = vmatprep.mubr.bf16.mxu0 %v3221_v2 }
 0x28b   : > { %v1470_v51 = vmul.f32 %v1390_v49, %v1310_v45  ;;  %v1321_v45 = vld [vmem:[%s3864_s22 + $0xd0] sm:$0xff]  ;;  %v1322_v49 = vld [vmem:[%s3864_s22 + $0xd8] sm:$0xff] }
 0x28d   : > { %v1502_v50 = vadd.f32 %v1470_v51, %v3706_v11 }
 0x28e   : > { %v1392_v57 = vpop.permute.xlu0 %1391 }
 0x28f   : > { %v1526_v58 = vpack.c.bf16 %v1502_v50, %v1501_v52  ;;  %v1471_v61 = vmul.f32 %v1392_v57, %v1311_v56  ;;  %v1323_v57 = vld [vmem:[%s3864_s22 + $0xe0] sm:$0xff] }
 0x291   : > { %2606 = vmatmul.mubr.msk.bf16.gmra.mxu0 %vm1571_vm1, %v1526_v58  ;;  %v1503_v1 = vadd.f32 %v1471_v61, %v3714_v18 }
 0x292   : > { %v1394_v48 = vpop.permute.xlu1 %1393  ;;  %1732 = vmatprep.mubr.bf16.mxu0 %v3221_v2 }
 0x293   : > { %v1472_v0 = vmul.f32 %v1394_v48, %v1312_v59  ;;  %v1324_v59 = vld [vmem:[%s3864_s22 + $0xe8] sm:$0xff] }
 0x295   : > { %v1504_v3 = vadd.f32 %v1472_v0, %v3722_v34 }
 0x296   : > { %v1396_v5 = vpop.permute.xlu0 %1395 }
 0x297   : > { %v1527_v11 = vpack.c.bf16 %v1504_v3, %v1503_v1  ;;  %v1473_v10 = vmul.f32 %v1396_v5, %v1313_v55  ;;  %v1325_v55 = vld [vmem:[%s3864_s22 + $0xf0] sm:$0xff] }
 0x299   : > { %2607 = vmatmul.mubr.msk.bf16.gmra.mxu0 %vm1571_vm1, %v1527_v11  ;;  %v1505_v62 = vadd.f32 %v1473_v10, %v3730_v44  ;;  %v1326_v11 = vld [vmem:[%s3864_s22 + $0xf8] sm:$0xff]  ;;  %s3159_s22 = scalar_lea.vmem %s4150_s13, 4096 }
 0x29a   : > { %v1398_v22 = vpop.permute.xlu1 %1397  ;;  %1742 = vmatprep.mubr.bf16.mxu0 %v3221_v2  ;;  %p3160_p11 = scmp.ne.s32.totalorder %s4150_s13, %s3159_s22  ;;  %p3167_p1 = scmp.lt.s32.totalorder %s3165_s14, %s3159_s22 }
 0x29b   : > { %v1474_v30 = vmul.f32 %v1398_v22, %v1314_v7 }
 0x29c   : > { %p3161_p12 = pnand %p3160_p11, %p3324_p5  ;;  %p3168_p2 = por %p3167_p1, %p3166_p0 }
 0x29d   : > { %v1506_v18 = vadd.f32 %v1474_v30, %v3738_v53 }
 0x29e   : > { %v1400_v14 = vpop.permute.xlu0 %1399  ;;  %p3162_p13 = pneg %p3161_p12 }
 0x29f   : > { %v1528_v34 = vpack.c.bf16 %v1506_v18, %v1505_v62  ;;  %v1475_v24 = vmul.f32 %v1400_v14, %v1315_v12 }
 0x2a0   : > { %p3169_p3 = pnand %p3168_p2, %p3162_p13 }
 0x2a1   : > { %2608 = vmatmul.mubr.msk.bf16.gmra.mxu0 %vm1571_vm1, %v1528_v34  ;;  %v1507_v28 = vadd.f32 %v1475_v24, %v3746_v63 }
 0x2a2   : > { %v1402_v16 = vpop.permute.xlu1 %1401  ;;  %1752 = vmatprep.mubr.bf16.mxu0 %v3221_v2 }
 0x2a3   : > { %v1476_v27 = vmul.f32 %v1402_v16, %v1316_v6 }
 0x2a5   : > { %v1508_v44 = vadd.f32 %v1476_v27, %v3754_v9 }
 0x2a6   : > { %v1404_v13 = vpop.permute.xlu0 %1403 }
 0x2a7   : > { %v1529_v53 = vpack.c.bf16 %v1508_v44, %v1507_v28  ;;  %v1477_v31 = vmul.f32 %v1404_v13, %v1317_v15 }
 0x2a9   : > { %2609 = vmatmul.mubr.msk.bf16.gmra.mxu0 %vm1571_vm1, %v1529_v53  ;;  %v1509_v37 = vadd.f32 %v1477_v31, %v3762_v17 }
 0x2aa   : > { %v1406_v23 = vpop.permute.xlu1 %1405  ;;  %1762 = vmatprep.mubr.bf16.mxu0 %v3221_v2 }
 0x2ab   : > { %v1478_v32 = vmul.f32 %v1406_v23, %v1318_v29 }
 0x2ad   : > { %v1510_v63 = vadd.f32 %v1478_v32, %v3770_v35 }
 0x2ae   : > { %v1408_v40 = vpop.permute.xlu0 %1407 }
 0x2af   : > { %v1530_v9 = vpack.c.bf16 %v1510_v63, %v1509_v37  ;;  %v1479_v33 = vmul.f32 %v1408_v40, %v1319_v38 }
 0x2b1   : > { %2610 = vmatmul.mubr.msk.bf16.gmra.mxu0 %vm1571_vm1, %v1530_v9  ;;  %v1511_v41 = vadd.f32 %v1479_v33, %v3781_v47 }
 0x2b2   : > { %v1410_v42 = vpop.permute.xlu1 %1409  ;;  %1772 = vmatprep.mubr.bf16.mxu0 %v3221_v2 }
 0x2b3   : > { %v1480_v43 = vmul.f32 %v1410_v42, %v1320_v36 }
 0x2b5   : > { %v1512_v17 = vadd.f32 %v1480_v43, %v3792_v60 }
 0x2b6   : > { %v1412_v46 = vpop.permute.xlu0 %1411 }
 0x2b7   : > { %v1531_v35 = vpack.c.bf16 %v1512_v17, %v1511_v41  ;;  %v1481_v51 = vmul.f32 %v1412_v46, %v1321_v45 }
 0x2b9   : > { %2611 = vmatmul.mubr.msk.bf16.gmra.mxu0 %vm1571_vm1, %v1531_v35  ;;  %v1513_v56 = vadd.f32 %v1481_v51, %v3800_v8 }
 0x2ba   : > { %v1414_v52 = vpop.permute.xlu1 %1413  ;;  %1782 = vmatprep.mubr.bf16.mxu0 %v3221_v2 }
 0x2bb   : > { %v1482_v50 = vmul.f32 %v1414_v52, %v1322_v49 }
 0x2bd   : > { %v1514_v47 = vadd.f32 %v1482_v50, %v3808_v26 }
 0x2be   : > { %v1416_v58 = vpop.permute.xlu0 %1415 }
 0x2bf   : > { %v1532_v60 = vpack.c.bf16 %v1514_v47, %v1513_v56  ;;  %v1483_v61 = vmul.f32 %v1416_v58, %v1323_v57 }
 0x2c1   : > { %2612 = vmatmul.mubr.msk.bf16.gmra.mxu0 %vm1571_vm1, %v1532_v60  ;;  %v1515_v1 = vadd.f32 %v1483_v61, %v3819_v39  ;;  %v1539_v39 = vld [vmem:[%s4202_s7] sm:$0x3] }
 0x2c2   : > { %v1418_v48 = vpop.permute.xlu1 %1417  ;;  %1792 = vmatprep.mubr.bf16.mxu0 %v3221_v2  ;;  %v4000_v18 = vrot.slane %v1539_v39, %v497_v20 }
 0x2c3   : > { %v1484_v0 = vmul.f32 %v1418_v48, %v1324_v59 }
 0x2c5   : > { %v1516_v3 = vadd.f32 %v1484_v0, %v3830_v54 }
 0x2c6   : > { %v1420_v8 = vpop.permute.xlu0 %1419 }
 0x2c7   : > { %v1533_v5 = vpack.c.bf16 %v1516_v3, %v1515_v1  ;;  %v1485_v26 = vmul.f32 %v1420_v8, %v1325_v55 }
 0x2c9   : > { %2613 = vmatmul.mubr.msk.bf16.gmra.mxu0 %vm1571_vm1, %v1533_v5  ;;  %v1517_v22 = vadd.f32 %v1485_v26, %v3838_v4 }
 0x2ca   : > { %v1422_v7 = vpop.permute.xlu1 %1421  ;;  %1802 = vmatprep.mubr.bf16.mxu0 %v3221_v2  ;;  %v4004_v2 = vrot.slane %v1539_v39, %v493_v21 }
 0x2cb   : > { %v1486_v10 = vmul.f32 %v1422_v7, %v1326_v11 }
 0x2cd   : > { %v1518_v30 = vadd.f32 %v1486_v10, %v3846_v25 }
 0x2cf   : > { %v1534_v62 = vpack.c.bf16 %v1518_v30, %v1517_v22 }
 0x2d1   : > { %2614 = vmatmul.mubr.msk.bf16.gmra.mxu0 %vm1571_vm1, %v1534_v62 }
 0x319   : > { %v1654_v54 = vpop.f32.mrf.mxu0 }
 0x31a   : > { %v1655_v34 = vadd.f32 %v1654_v54, %v4004_v2 }
 0x31b   : > { %v1656_v12 = vpop.f32.mrf.mxu0 }
 0x31c   : > { %v1657_v25 = vadd.f32 %v1656_v12, %v4000_v18  ;;  %v1813_v44 = vmax.f32 %v1655_v34, 0.0 }
 0x31d   : > { %v1658_v4 = vpop.f32.mrf.mxu0 }
 0x31e   : > { %v1659_v14 = vadd.f32 %v1658_v4, %v4004_v2  ;;  %v1814_v28 = vmax.f32 %v1657_v25, 0.0 }
 0x31f   : > { %v1660_v6 = vpop.f32.mrf.mxu0 }
 0x320   : > { %v1661_v24 = vadd.f32 %v1660_v6, %v4000_v18  ;;  %v1815_v16 = vmax.f32 %v1659_v14, 0.0 }
 0x321   : > { %v1664_v27 = vpop.f32.mrf.mxu0 }
 0x322   : > { %v1816_v20 = vmax.f32 %v1661_v24, 0.0  ;;  %v1877_v21 = vpack.c.bf16 %v1815_v16, %v1813_v44  ;;  %v1665_v31 = vadd.f32 %v1664_v27, %v4004_v2 }
 0x323   : > { %v1666_v15 = vpop.f32.mrf.mxu0 }
 0x324   : > { %v1878_v19 = vpack.c.bf16 %v1816_v20, %v1814_v28  ;;  %v1667_v53 = vadd.f32 %v1666_v15, %v4000_v18  ;;  %v1817_v9 = vmax.f32 %v1665_v31, 0.0 }
 0x325   : > { %v1668_v13 = vpop.f32.mrf.mxu0 }
 0x326   : > { %v1669_v29 = vadd.f32 %v1668_v13, %v4004_v2  ;;  %2076 = vmatprep.mubr.bf16.mxu1 %v1878_v19  ;;  %v1818_v38 = vmax.f32 %v1667_v53, 0.0 }
 0x327   : > { %v1670_v23 = vpop.f32.mrf.mxu0  ;;  %2077 = vmatmul.mubr.bf16.vlgmr.msra.gmra.mxu1 %v1877_v21 }
 0x328   : > { %v1671_v32 = vadd.f32 %v1670_v23, %v4000_v18  ;;  %v1819_v37 = vmax.f32 %v1669_v29, 0.0 }
 0x329   : > { %v1674_v63 = vpop.f32.mrf.mxu0 }
 0x32a   : > { %v1820_v40 = vmax.f32 %v1671_v32, 0.0  ;;  %v1879_v42 = vpack.c.bf16 %v1819_v37, %v1817_v9  ;;  %v1675_v45 = vadd.f32 %v1674_v63, %v4004_v2 }
 0x32b   : > { %v1676_v36 = vpop.f32.mrf.mxu0 }
 0x32c   : > { %v1880_v33 = vpack.c.bf16 %v1820_v40, %v1818_v38  ;;  %v1677_v41 = vadd.f32 %v1676_v36, %v4000_v18  ;;  %v1821_v56 = vmax.f32 %v1675_v45, 0.0 }
 0x32d   : > { %v1678_v43 = vpop.f32.mrf.mxu0 }
 0x32e   : > { %v1679_v17 = vadd.f32 %v1678_v43, %v4004_v2  ;;  %2084 = vmatprep.mubr.bf16.mxu1 %v1880_v33  ;;  %v1822_v52 = vmax.f32 %v1677_v41, 0.0 }
 0x32f   : > { %v1680_v46 = vpop.f32.mrf.mxu0  ;;  %2085 = vmatmul.mubr.bf16.gmra.mxu1 %v1879_v42 }
 0x330   : > { %v1681_v35 = vadd.f32 %v1680_v46, %v4000_v18  ;;  %v1823_v49 = vmax.f32 %v1679_v17, 0.0 }
 0x331   : > { %v1684_v51 = vpop.f32.mrf.mxu0 }
 0x332   : > { %v1824_v50 = vmax.f32 %v1681_v35, 0.0  ;;  %v1881_v58 = vpack.c.bf16 %v1823_v49, %v1821_v56  ;;  %v1685_v48 = vadd.f32 %v1684_v51, %v4004_v2 }
 0x333   : > { %v1686_v47 = vpop.f32.mrf.mxu0 }
 0x334   : > { %v1882_v57 = vpack.c.bf16 %v1824_v50, %v1822_v52  ;;  %v1687_v59 = vadd.f32 %v1686_v47, %v4000_v18  ;;  %v1825_v11 = vmax.f32 %v1685_v48, 0.0 }
 0x335   : > { %v1688_v60 = vpop.f32.mrf.mxu0 }
 0x336   : > { %v1689_v61 = vadd.f32 %v1688_v60, %v4004_v2  ;;  %2092 = vmatprep.mubr.bf16.mxu1 %v1882_v57  ;;  %v1826_v8 = vmax.f32 %v1687_v59, 0.0 }
 0x337   : > { %v1690_v0 = vpop.f32.mrf.mxu0  ;;  %2093 = vmatmul.mubr.bf16.gmra.mxu1 %v1881_v58 }
 0x338   : > { %v1691_v1 = vadd.f32 %v1690_v0, %v4000_v18  ;;  %v1827_v3 = vmax.f32 %v1689_v61, 0.0 }
 0x339   : > { %v1694_v55 = vpop.f32.mrf.mxu0 }
 0x33a   : > { %v1828_v5 = vmax.f32 %v1691_v1, 0.0  ;;  %v1883_v10 = vpack.c.bf16 %v1827_v3, %v1825_v11  ;;  %v1695_v39 = vadd.f32 %v1694_v55, %v4004_v2 }
 0x33b   : > { %v1696_v26 = vpop.f32.mrf.mxu0 }
 0x33c   : > { %v1884_v7 = vpack.c.bf16 %v1828_v5, %v1826_v8  ;;  %v1697_v30 = vadd.f32 %v1696_v26, %v4000_v18  ;;  %v1829_v6 = vmax.f32 %v1695_v39, 0.0 }
 0x33d   : > { %v1698_v22 = vpop.f32.mrf.mxu0 }
 0x33e   : > { %v1699_v62 = vadd.f32 %v1698_v22, %v4004_v2  ;;  %2100 = vmatprep.mubr.bf16.mxu1 %v1884_v7  ;;  %v1830_v14 = vmax.f32 %v1697_v30, 0.0 }
 0x33f   : > { %v1700_v54 = vpop.f32.mrf.mxu0  ;;  %2101 = vmatmul.mubr.bf16.gmra.mxu1 %v1883_v10 }
 0x340   : > { %v1701_v12 = vadd.f32 %v1700_v54, %v4000_v18  ;;  %v1831_v4 = vmax.f32 %v1699_v62, 0.0 }
 0x341   : > { %v1704_v25 = vpop.f32.mrf.mxu0 }
 0x342   : > { %v1832_v34 = vmax.f32 %v1701_v12, 0.0  ;;  %v1885_v27 = vpack.c.bf16 %v1831_v4, %v1829_v6  ;;  %v1705_v15 = vadd.f32 %v1704_v25, %v4004_v2 }
 0x343   : > { %v1706_v24 = vpop.f32.mrf.mxu0 }
 0x344   : > { %v1886_v16 = vpack.c.bf16 %v1832_v34, %v1830_v14  ;;  %v1707_v20 = vadd.f32 %v1706_v24, %v4000_v18  ;;  %v1833_v23 = vmax.f32 %v1705_v15, 0.0 }
 0x345   : > { %v1708_v28 = vpop.f32.mrf.mxu0 }
 0x346   : > { %v1709_v44 = vadd.f32 %v1708_v28, %v4004_v2  ;;  %2108 = vmatprep.mubr.bf16.mxu1 %v1886_v16  ;;  %v1834_v29 = vmax.f32 %v1707_v20, 0.0 }
 0x347   : > { %v1710_v19 = vpop.f32.mrf.mxu0  ;;  %2109 = vmatmul.mubr.bf16.gmra.mxu1 %v1885_v27 }
 0x348   : > { %v1711_v21 = vadd.f32 %v1710_v19, %v4000_v18  ;;  %v1835_v13 = vmax.f32 %v1709_v44, 0.0 }
 0x349   : > { %v1714_v53 = vpop.f32.mrf.mxu0 }
 0x34a   : > { %v1836_v31 = vmax.f32 %v1711_v21, 0.0  ;;  %v1887_v63 = vpack.c.bf16 %v1835_v13, %v1833_v23  ;;  %v1715_v36 = vadd.f32 %v1714_v53, %v4004_v2 }
 0x34b   : > { %v1716_v32 = vpop.f32.mrf.mxu0 }
 0x34c   : > { %v1888_v37 = vpack.c.bf16 %v1836_v31, %v1834_v29  ;;  %v1717_v40 = vadd.f32 %v1716_v32, %v4000_v18  ;;  %v1837_v46 = vmax.f32 %v1715_v36, 0.0 }
 0x34d   : > { %v1718_v38 = vpop.f32.mrf.mxu0 }
 0x34e   : > { %v1719_v9 = vadd.f32 %v1718_v38, %v4004_v2  ;;  %2116 = vmatprep.mubr.bf16.mxu1 %v1888_v37  ;;  %v1838_v17 = vmax.f32 %v1717_v40, 0.0 }
 0x34f   : > { %v1720_v33 = vpop.f32.mrf.mxu0  ;;  %2117 = vmatmul.mubr.bf16.gmra.mxu1 %v1887_v63 }
 0x350   : > { %v1721_v42 = vadd.f32 %v1720_v33, %v4000_v18  ;;  %v1839_v43 = vmax.f32 %v1719_v9, 0.0 }
 0x351   : > { %v1724_v41 = vpop.f32.mrf.mxu0 }
 0x352   : > { %v1840_v45 = vmax.f32 %v1721_v42, 0.0  ;;  %v1889_v51 = vpack.c.bf16 %v1839_v43, %v1837_v46  ;;  %v1725_v47 = vadd.f32 %v1724_v41, %v4004_v2 }
 0x353   : > { %v1726_v35 = vpop.f32.mrf.mxu0 }
 0x354   : > { %v1890_v49 = vpack.c.bf16 %v1840_v45, %v1838_v17  ;;  %v1727_v50 = vadd.f32 %v1726_v35, %v4000_v18  ;;  %v1841_v0 = vmax.f32 %v1725_v47, 0.0 }
 0x355   : > { %v1728_v52 = vpop.f32.mrf.mxu0 }
 0x356   : > { %v1729_v56 = vadd.f32 %v1728_v52, %v4004_v2  ;;  %2124 = vmatprep.mubr.bf16.mxu1 %v1890_v49  ;;  %v1842_v61 = vmax.f32 %v1727_v50, 0.0 }
 0x357   : > { %v1730_v57 = vpop.f32.mrf.mxu0  ;;  %2125 = vmatmul.mubr.bf16.gmra.mxu1 %v1889_v51 }
 0x358   : > { %v1731_v58 = vadd.f32 %v1730_v57, %v4000_v18  ;;  %v1843_v60 = vmax.f32 %v1729_v56, 0.0 }
 0x359   : > { %v1734_v59 = vpop.f32.mrf.mxu0 }
 0x35a   : > { %v1844_v48 = vmax.f32 %v1731_v58, 0.0  ;;  %v1891_v55 = vpack.c.bf16 %v1843_v60, %v1841_v0  ;;  %v1735_v26 = vadd.f32 %v1734_v59, %v4004_v2 }
 0x35b   : > { %v1736_v1 = vpop.f32.mrf.mxu0 }
 0x35c   : > { %v1892_v3 = vpack.c.bf16 %v1844_v48, %v1842_v61  ;;  %v1737_v5 = vadd.f32 %v1736_v1, %v4000_v18  ;;  %v1845_v54 = vmax.f32 %v1735_v26, 0.0 }
 0x35d   : > { %v1738_v8 = vpop.f32.mrf.mxu0 }
 0x35e   : > { %v1739_v11 = vadd.f32 %v1738_v8, %v4004_v2  ;;  %2132 = vmatprep.mubr.bf16.mxu1 %v1892_v3  ;;  %v1846_v62 = vmax.f32 %v1737_v5, 0.0 }
 0x35f   : > { %v1740_v7 = vpop.f32.mrf.mxu0  ;;  %2133 = vmatmul.mubr.bf16.gmra.mxu1 %v1891_v55 }
 0x360   : > { %v1741_v10 = vadd.f32 %v1740_v7, %v4000_v18  ;;  %v1847_v22 = vmax.f32 %v1739_v11, 0.0 }
 0x361   : > { %v1744_v30 = vpop.f32.mrf.mxu0 }
 0x362   : > { %v1848_v39 = vmax.f32 %v1741_v10, 0.0  ;;  %v1893_v25 = vpack.c.bf16 %v1847_v22, %v1845_v54  ;;  %v1745_v24 = vadd.f32 %v1744_v30, %v4004_v2 }
 0x363   : > { %v1746_v12 = vpop.f32.mrf.mxu0 }
 0x364   : > { %v1894_v4 = vpack.c.bf16 %v1848_v39, %v1846_v62  ;;  %v1747_v34 = vadd.f32 %v1746_v12, %v4000_v18  ;;  %v1849_v19 = vmax.f32 %v1745_v24, 0.0 }
 0x365   : > { %v1748_v14 = vpop.f32.mrf.mxu0 }
 0x366   : > { %v1749_v6 = vadd.f32 %v1748_v14, %v4004_v2  ;;  %2140 = vmatprep.mubr.bf16.mxu1 %v1894_v4  ;;  %v1850_v44 = vmax.f32 %v1747_v34, 0.0 }
 0x367   : > { %v1750_v16 = vpop.f32.mrf.mxu0  ;;  %2141 = vmatmul.mubr.bf16.gmra.mxu1 %v1893_v25 }
 0x368   : > { %v1751_v27 = vadd.f32 %v1750_v16, %v4000_v18  ;;  %v1851_v28 = vmax.f32 %v1749_v6, 0.0 }
 0x369   : > { %v1754_v20 = vpop.f32.mrf.mxu0 }
 0x36a   : > { %v1852_v15 = vmax.f32 %v1751_v27, 0.0  ;;  %v1895_v53 = vpack.c.bf16 %v1851_v28, %v1849_v19  ;;  %v1755_v32 = vadd.f32 %v1754_v20, %v4004_v2 }
 0x36b   : > { %v1756_v21 = vpop.f32.mrf.mxu0 }
 0x36c   : > { %v1896_v13 = vpack.c.bf16 %v1852_v15, %v1850_v44  ;;  %v1757_v31 = vadd.f32 %v1756_v21, %v4000_v18  ;;  %v1853_v33 = vmax.f32 %v1755_v32, 0.0 }
 0x36d   : > { %v1758_v29 = vpop.f32.mrf.mxu0 }
 0x36e   : > { %v1759_v23 = vadd.f32 %v1758_v29, %v4004_v2  ;;  %2148 = vmatprep.mubr.bf16.mxu1 %v1896_v13  ;;  %v1854_v9 = vmax.f32 %v1757_v31, 0.0 }
 0x36f   : > { %v1760_v37 = vpop.f32.mrf.mxu0  ;;  %2149 = vmatmul.mubr.bf16.gmra.mxu1 %v1895_v53 }
 0x370   : > { %v1761_v63 = vadd.f32 %v1760_v37, %v4000_v18  ;;  %v1855_v38 = vmax.f32 %v1759_v23, 0.0 }
 0x371   : > { %v1764_v40 = vpop.f32.mrf.mxu0 }
 0x372   : > { %v1856_v36 = vmax.f32 %v1761_v63, 0.0  ;;  %v1897_v41 = vpack.c.bf16 %v1855_v38, %v1853_v33  ;;  %v1765_v35 = vadd.f32 %v1764_v40, %v4004_v2 }
 0x373   : > { %v1766_v42 = vpop.f32.mrf.mxu0 }
 0x374   : > { %v1898_v43 = vpack.c.bf16 %v1856_v36, %v1854_v9  ;;  %v1767_v45 = vadd.f32 %v1766_v42, %v4000_v18  ;;  %v1857_v57 = vmax.f32 %v1765_v35, 0.0 }
 0x375   : > { %v1768_v17 = vpop.f32.mrf.mxu0 }
 0x376   : > { %v1769_v46 = vadd.f32 %v1768_v17, %v4004_v2  ;;  %2156 = vmatprep.mubr.bf16.mxu1 %v1898_v43  ;;  %v1858_v56 = vmax.f32 %v1767_v45, 0.0 }
 0x377   : > { %v1770_v49 = vpop.f32.mrf.mxu0  ;;  %2157 = vmatmul.mubr.bf16.gmra.mxu1 %v1897_v41 }
 0x378   : > { %v1771_v51 = vadd.f32 %v1770_v49, %v4000_v18  ;;  %v1859_v52 = vmax.f32 %v1769_v46, 0.0 }
 0x379   : > { %v1774_v50 = vpop.f32.mrf.mxu0 }
 0x37a   : > { %v1860_v47 = vmax.f32 %v1771_v51, 0.0  ;;  %v1899_v59 = vpack.c.bf16 %v1859_v52, %v1857_v57  ;;  %v1775_v1 = vadd.f32 %v1774_v50, %v4004_v2  ;;  %v4073_v50 = vld [vmem:[%s4204_s9] ss:$0 sm:$0xff] }
 0x37b   : > { %v1776_v58 = vpop.f32.mrf.mxu0 }
 0x37c   : > { %v1900_v60 = vpack.c.bf16 %v1860_v47, %v1858_v56  ;;  %v1777_v48 = vadd.f32 %v1776_v58, %v4000_v18  ;;  %v1861_v7 = vmax.f32 %v1775_v1, 0.0 }
 0x37d   : > { %v1778_v61 = vpop.f32.mrf.mxu0 }
 0x37e   : > { %v1779_v0 = vadd.f32 %v1778_v61, %v4004_v2  ;;  %2164 = vmatprep.mubr.bf16.mxu1 %v1900_v60  ;;  %v1862_v11 = vmax.f32 %v1777_v48, 0.0 }
 0x37f   : > { %v1780_v3 = vpop.f32.mrf.mxu0  ;;  %2165 = vmatmul.mubr.bf16.gmra.mxu1 %v1899_v59 }
 0x380   : > { %v1781_v55 = vadd.f32 %v1780_v3, %v4000_v18  ;;  %v1863_v8 = vmax.f32 %v1779_v0, 0.0 }
 0x381   : > { %v1784_v5 = vpop.f32.mrf.mxu0 }
 0x382   : > { %v1864_v26 = vmax.f32 %v1781_v55, 0.0  ;;  %v1901_v30 = vpack.c.bf16 %v1863_v8, %v1861_v7  ;;  %v1785_v12 = vadd.f32 %v1784_v5, %v4004_v2 }
 0x383   : > { %v1786_v10 = vpop.f32.mrf.mxu0 }
 0x384   : > { %v1902_v22 = vpack.c.bf16 %v1864_v26, %v1862_v11  ;;  %v1787_v39 = vadd.f32 %v1786_v10, %v4000_v18  ;;  %v1865_v16 = vmax.f32 %v1785_v12, 0.0 }
 0x385   : > { %v1788_v62 = vpop.f32.mrf.mxu0 }
 0x386   : > { %v1789_v54 = vadd.f32 %v1788_v62, %v4004_v2  ;;  %2172 = vmatprep.mubr.bf16.mxu1 %v1902_v22  ;;  %v1866_v6 = vmax.f32 %v1787_v39, 0.0 }
 0x387   : > { %v1790_v4 = vpop.f32.mrf.mxu0  ;;  %2173 = vmatmul.mubr.bf16.gmra.mxu1 %v1901_v30 }
 0x388   : > { %v1791_v25 = vadd.f32 %v1790_v4, %v4000_v18  ;;  %v1867_v14 = vmax.f32 %v1789_v54, 0.0 }
 0x389   : > { %v1794_v34 = vpop.f32.mrf.mxu0 }
 0x38a   : > { %v1868_v24 = vmax.f32 %v1791_v25, 0.0  ;;  %v1903_v20 = vpack.c.bf16 %v1867_v14, %v1865_v16  ;;  %v1795_v21 = vadd.f32 %v1794_v34, %v4004_v2 }
 0x38b   : > { %v1796_v27 = vpop.f32.mrf.mxu0 }
 0x38c   : > { %v1904_v28 = vpack.c.bf16 %v1868_v24, %v1866_v6  ;;  %v1797_v15 = vadd.f32 %v1796_v27, %v4000_v18  ;;  %v1869_v37 = vmax.f32 %v1795_v21, 0.0 }
 0x38d   : > { %v1798_v44 = vpop.f32.mrf.mxu0 }
 0x38e   : > { %v1799_v19 = vadd.f32 %v1798_v44, %v4004_v2  ;;  %2180 = vmatprep.mubr.bf16.mxu1 %v1904_v28  ;;  %v1870_v23 = vmax.f32 %v1797_v15, 0.0 }
 0x38f   : > { %v1800_v13 = vpop.f32.mrf.mxu0  ;;  %2181 = vmatmul.mubr.bf16.gmra.mxu1 %v1903_v20 }
 0x390   : > { %v1801_v53 = vadd.f32 %v1800_v13, %v4000_v18  ;;  %v1871_v29 = vmax.f32 %v1799_v19, 0.0 }
 0x391   : > { %v1804_v31 = vpop.f32.mrf.mxu0 }
 0x392   : > { %v1872_v32 = vmax.f32 %v1801_v53, 0.0  ;;  %v1905_v40 = vpack.c.bf16 %v1871_v29, %v1869_v37  ;;  %v1805_v42 = vadd.f32 %v1804_v31, %v4004_v2 }
 0x393   : > { %v1806_v63 = vpop.f32.mrf.mxu0 }
 0x394   : > { %v1906_v38 = vpack.c.bf16 %v1872_v32, %v1870_v23  ;;  %v1807_v36 = vadd.f32 %v1806_v63, %v4000_v18  ;;  %v1873_v35 = vmax.f32 %v1805_v42, 0.0 }
 0x395   : > { %v1808_v9 = vpop.f32.mrf.mxu0 }
 0x396   : > { %v1809_v33 = vadd.f32 %v1808_v9, %v4004_v2  ;;  %2188 = vmatprep.mubr.bf16.mxu1 %v1906_v38  ;;  %v1874_v45 = vmax.f32 %v1807_v36, 0.0 }
 0x397   : > { %v1810_v43 = vpop.f32.mrf.mxu0  ;;  %2189 = vmatmul.mubr.bf16.gmra.mxu1 %v1905_v40 }
 0x398   : > { %v1811_v41 = vadd.f32 %v1810_v43, %v4000_v18  ;;  %v1875_v17 = vmax.f32 %v1809_v33, 0.0 }
 0x39a   : > { %v1876_v46 = vmax.f32 %v1811_v41, 0.0  ;;  %v1907_v51 = vpack.c.bf16 %v1875_v17, %v1873_v35 }
 0x39c   : > { %v1908_v49 = vpack.c.bf16 %v1876_v46, %v1874_v45 }
 0x39e   : > { %2196 = vmatprep.mubr.bf16.mxu1 %v1908_v49 }
 0x39f   : > { %2197 = vmatmul.mubr.bf16.gmra.mxu1 %v1907_v51 }
 0x3e7   : > { %v2766_v52 = vpop.f32.mrf.mxu1 }
 0x3e9   : > { %v2767_v56 = vpop.f32.mrf.mxu1 }
 0x3ea   : > { %v2768_v2 = vadd.f32 %v2767_v56, %v2766_v52 }
 0x3eb   : > { %v2769_v47 = vpop.f32.mrf.mxu1 }
 0x3ec   : > { %v2079_v57 = vadd.f32 %v2768_v2, %v4073_v50 }
 0x3ed   : > { %v2770_v18 = vpop.f32.mrf.mxu1 }
 0x3ee   : > { %v2205_v58 = vsub.f32 0.0, %v2079_v57  ;;  %v2771_v60 = vadd.f32 %v2770_v18, %v2769_v47 }
 0x3ef   : > { %v2772_v59 = vpop.f32.mrf.mxu1 }
 0x3f0   : > { %v2237_v61 = vmul.f32 1.442695, %v2205_v58  ;;  %v2082_v48 = vadd.f32 %v2771_v60, %v4073_v50 }
 0x3f1   : > { %v2773_v0 = vpop.f32.mrf.mxu1 }
 0x3f2   : > { %3031 = vpow2.f32 %v2237_v61  ;;  %v2206_v1 = vsub.f32 0.0, %v2082_v48  ;;  %v2774_v3 = vadd.f32 %v2773_v0, %v2772_v59 }
 0x3f3   : > { %v2775_v55 = vpop.f32.mrf.mxu1 }
 0x3f4   : > { %v2239_v8 = vmul.f32 1.442695, %v2206_v1  ;;  %v2087_v5 = vadd.f32 %v2774_v3, %v4073_v50 }
 0x3f5   : > { %v2776_v11 = vpop.f32.mrf.mxu1 }
 0x3f6   : > { %3033 = vpow2.f32 %v2239_v8  ;;  %v2207_v26 = vsub.f32 0.0, %v2087_v5  ;;  %v2777_v7 = vadd.f32 %v2776_v11, %v2775_v55 }
 0x3f7   : > { %v2778_v10 = vpop.f32.mrf.mxu1 }
 0x3f8   : > { %v2241_v22 = vmul.f32 1.442695, %v2207_v26  ;;  %v2090_v30 = vadd.f32 %v2777_v7, %v4073_v50 }
 0x3f9   : > { %v2779_v62 = vpop.f32.mrf.mxu1 }
 0x3fa   : > { %3035 = vpow2.f32 %v2241_v22  ;;  %v2208_v39 = vsub.f32 0.0, %v2090_v30  ;;  %v2780_v54 = vadd.f32 %v2779_v62, %v2778_v10 }
 0x3fb   : > { %v2781_v12 = vpop.f32.mrf.mxu1 }
 0x3fc   : > { %v2243_v4 = vmul.f32 1.442695, %v2208_v39  ;;  %v2095_v25 = vadd.f32 %v2780_v54, %v4073_v50 }
 0x3fd   : > { %v2782_v14 = vpop.f32.mrf.mxu1 }
 0x3fe   : > { %3037 = vpow2.f32 %v2243_v4  ;;  %v2209_v34 = vsub.f32 0.0, %v2095_v25  ;;  %v2783_v6 = vadd.f32 %v2782_v14, %v2781_v12 }
 0x3ff   : > { %v3032_v24 = vpop.eup %3031  ;;  %v2784_v16 = vpop.f32.mrf.mxu1 }
 0x400   : > { %v2301_v27 = vadd.f32 1.0, %v3032_v24  ;;  %v2245_v28 = vmul.f32 1.442695, %v2209_v34  ;;  %v2098_v20 = vadd.f32 %v2783_v6, %v4073_v50 }
 0x401   : > { %v2785_v44 = vpop.f32.mrf.mxu1 }
 0x402   : > { %3039 = vrcp.f32 %v2301_v27  ;;  %v2210_v15 = vsub.f32 0.0, %v2098_v20  ;;  %v2786_v19 = vadd.f32 %v2785_v44, %v2784_v16 }
 0x403   : > { %v3034_v21 = vpop.eup %3033  ;;  %3041 = vpow2.f32 %v2245_v28  ;;  %v2787_v13 = vpop.f32.mrf.mxu1 }
 0x404   : > { %v2302_v53 = vadd.f32 1.0, %v3034_v21  ;;  %v2247_v29 = vmul.f32 1.442695, %v2210_v15  ;;  %v2103_v31 = vadd.f32 %v2786_v19, %v4073_v50 }
 0x405   : > { %v2788_v23 = vpop.f32.mrf.mxu1 }
 0x406   : > { %3043 = vrcp.f32 %v2302_v53  ;;  %v2211_v32 = vsub.f32 0.0, %v2103_v31  ;;  %v2789_v37 = vadd.f32 %v2788_v23, %v2787_v13 }
 0x407   : > { %v3036_v63 = vpop.eup %3035  ;;  %3045 = vpow2.f32 %v2247_v29  ;;  %v2790_v38 = vpop.f32.mrf.mxu1 }
 0x408   : > { %v2303_v40 = vadd.f32 1.0, %v3036_v63  ;;  %v2249_v9 = vmul.f32 1.442695, %v2211_v32  ;;  %v2106_v36 = vadd.f32 %v2789_v37, %v4073_v50 }
 0x409   : > { %v2791_v33 = vpop.f32.mrf.mxu1 }
 0x40a   : > { %3047 = vrcp.f32 %v2303_v40  ;;  %v2212_v42 = vsub.f32 0.0, %v2106_v36  ;;  %v2792_v43 = vadd.f32 %v2791_v33, %v2790_v38 }
 0x40b   : > { %v3038_v41 = vpop.eup %3037  ;;  %3049 = vpow2.f32 %v2249_v9  ;;  %v2793_v17 = vpop.f32.mrf.mxu1 }
 0x40c   : > { %v2304_v45 = vadd.f32 1.0, %v3038_v41  ;;  %v2251_v46 = vmul.f32 1.442695, %v2212_v42  ;;  %v2111_v35 = vadd.f32 %v2792_v43, %v4073_v50 }
 0x40d   : > { %v2794_v49 = vpop.f32.mrf.mxu1 }
 0x40e   : > { %3051 = vrcp.f32 %v2304_v45  ;;  %v2213_v51 = vsub.f32 0.0, %v2111_v35  ;;  %v2795_v52 = vadd.f32 %v2794_v49, %v2793_v17 }
 0x40f   : > { %v3040_v56 = vpop.eup %3039  ;;  %3053 = vpow2.f32 %v2251_v46  ;;  %v2796_v2 = vpop.f32.mrf.mxu1 }
 0x410   : > { %v3042_v47 = vpop.eup %3041  ;;  %2397 = vst [vmem:[%s4087_s30] sm:$0xff] %v3040_v56  ;;  %v2253_v57 = vmul.f32 1.442695, %v2213_v51  ;;  %v2114_v18 = vadd.f32 %v2795_v52, %v4073_v50 }
 0x411   : > { %v2305_v58 = vadd.f32 1.0, %v3042_v47  ;;  %v2797_v60 = vpop.f32.mrf.mxu1 }
 0x412   : > { %3055 = vpow2.f32 %v2253_v57  ;;  %v2214_v59 = vsub.f32 0.0, %v2114_v18  ;;  %v2798_v61 = vadd.f32 %v2797_v60, %v2796_v2 }
 0x413   : > { %v3044_v48 = vpop.eup %3043  ;;  %3057 = vrcp.f32 %v2305_v58  ;;  %v2799_v0 = vpop.f32.mrf.mxu1 }
 0x414   : > { %v3046_v1 = vpop.eup %3045  ;;  %2398 = vst [vmem:[%s4087_s30 + $0x8] sm:$0xff] %v3044_v48  ;;  %v2255_v3 = vmul.f32 1.442695, %v2214_v59  ;;  %v2119_v55 = vadd.f32 %v2798_v61, %v4073_v50 }
 0x415   : > { %v2306_v8 = vadd.f32 1.0, %v3046_v1  ;;  %v2800_v5 = vpop.f32.mrf.mxu1 }
 0x416   : > { %3059 = vpow2.f32 %v2255_v3  ;;  %v2215_v11 = vsub.f32 0.0, %v2119_v55  ;;  %v2801_v26 = vadd.f32 %v2800_v5, %v2799_v0 }
 0x417   : > { %v3048_v7 = vpop.eup %3047  ;;  %3061 = vrcp.f32 %v2306_v8  ;;  %v2802_v10 = vpop.f32.mrf.mxu1 }
 0x418   : > { %v3050_v22 = vpop.eup %3049  ;;  %2399 = vst [vmem:[%s4087_s30 + $0x10] sm:$0xff] %v3048_v7  ;;  %v2257_v30 = vmul.f32 1.442695, %v2215_v11  ;;  %v2122_v62 = vadd.f32 %v2801_v26, %v4073_v50 }
 0x419   : > { %v2307_v39 = vadd.f32 1.0, %v3050_v22  ;;  %v2803_v54 = vpop.f32.mrf.mxu1 }
 0x41a   : > { %3063 = vpow2.f32 %v2257_v30  ;;  %v2216_v12 = vsub.f32 0.0, %v2122_v62  ;;  %v2804_v4 = vadd.f32 %v2803_v54, %v2802_v10 }
 0x41b   : > { %v3052_v25 = vpop.eup %3051  ;;  %3065 = vrcp.f32 %v2307_v39  ;;  %v2805_v14 = vpop.f32.mrf.mxu1 }
 0x41c   : > { %v3054_v34 = vpop.eup %3053  ;;  %2400 = vst [vmem:[%s4087_s30 + $0x18] sm:$0xff] %v3052_v25  ;;  %v2259_v6 = vmul.f32 1.442695, %v2216_v12  ;;  %v2127_v24 = vadd.f32 %v2804_v4, %v4073_v50 }
 0x41d   : > { %v2308_v16 = vadd.f32 1.0, %v3054_v34  ;;  %v2806_v27 = vpop.f32.mrf.mxu1 }
 0x41e   : > { %3067 = vpow2.f32 %v2259_v6  ;;  %v2217_v28 = vsub.f32 0.0, %v2127_v24  ;;  %v2807_v20 = vadd.f32 %v2806_v27, %v2805_v14 }
 0x41f   : > { %v3056_v44 = vpop.eup %3055  ;;  %3069 = vrcp.f32 %v2308_v16  ;;  %v2808_v15 = vpop.f32.mrf.mxu1 }
 0x420   : > { %v3058_v19 = vpop.eup %3057  ;;  %v2309_v21 = vadd.f32 1.0, %v3056_v44  ;;  %v2261_v13 = vmul.f32 1.442695, %v2217_v28  ;;  %v2130_v53 = vadd.f32 %v2807_v20, %v4073_v50 }
 0x421   : > { %2401 = vst [vmem:[%s4087_s30 + $0x20] sm:$0xff] %v3058_v19  ;;  %v2809_v29 = vpop.f32.mrf.mxu1 }
 0x422   : > { %3071 = vrcp.f32 %v2309_v21  ;;  %v2218_v31 = vsub.f32 0.0, %v2130_v53  ;;  %v2810_v23 = vadd.f32 %v2809_v29, %v2808_v15 }
 0x423   : > { %v3060_v32 = vpop.eup %3059  ;;  %3073 = vpow2.f32 %v2261_v13  ;;  %v2811_v37 = vpop.f32.mrf.mxu1 }
 0x424   : > { %v3062_v63 = vpop.eup %3061  ;;  %v2310_v38 = vadd.f32 1.0, %v3060_v32  ;;  %v2263_v40 = vmul.f32 1.442695, %v2218_v31  ;;  %v2135_v9 = vadd.f32 %v2810_v23, %v4073_v50 }
 0x425   : > { %2402 = vst [vmem:[%s4087_s30 + $0x28] sm:$0xff] %v3062_v63  ;;  %v2812_v36 = vpop.f32.mrf.mxu1 }
 0x426   : > { %3075 = vrcp.f32 %v2310_v38  ;;  %v2219_v33 = vsub.f32 0.0, %v2135_v9  ;;  %v2813_v42 = vadd.f32 %v2812_v36, %v2811_v37 }
 0x427   : > { %v3064_v43 = vpop.eup %3063  ;;  %3077 = vpow2.f32 %v2263_v40  ;;  %v2814_v41 = vpop.f32.mrf.mxu1 }
 0x428   : > { %v3066_v17 = vpop.eup %3065  ;;  %v2311_v45 = vadd.f32 1.0, %v3064_v43  ;;  %v2265_v46 = vmul.f32 1.442695, %v2219_v33  ;;  %v2138_v35 = vadd.f32 %v2813_v42, %v4073_v50 }
 0x429   : > { %2403 = vst [vmem:[%s4087_s30 + $0x30] sm:$0xff] %v3066_v17  ;;  %v2815_v49 = vpop.f32.mrf.mxu1 }
 0x42a   : > { %3079 = vrcp.f32 %v2311_v45  ;;  %v2220_v51 = vsub.f32 0.0, %v2138_v35  ;;  %v2816_v52 = vadd.f32 %v2815_v49, %v2814_v41 }
 0x42b   : > { %v3068_v56 = vpop.eup %3067  ;;  %3081 = vpow2.f32 %v2265_v46  ;;  %v2817_v2 = vpop.f32.mrf.mxu1 }
 0x42c   : > { %v3070_v47 = vpop.eup %3069  ;;  %v2312_v57 = vadd.f32 1.0, %v3068_v56  ;;  %v2267_v18 = vmul.f32 1.442695, %v2220_v51  ;;  %v2143_v58 = vadd.f32 %v2816_v52, %v4073_v50 }
 0x42d   : > { %2404 = vst [vmem:[%s4087_s30 + $0x38] sm:$0xff] %v3070_v47  ;;  %v2818_v60 = vpop.f32.mrf.mxu1 }
 0x42e   : > { %3083 = vrcp.f32 %v2312_v57  ;;  %v2221_v59 = vsub.f32 0.0, %v2143_v58  ;;  %v2819_v61 = vadd.f32 %v2818_v60, %v2817_v2 }
 0x42f   : > { %v3072_v48 = vpop.eup %3071  ;;  %3085 = vpow2.f32 %v2267_v18  ;;  %v2820_v0 = vpop.f32.mrf.mxu1 }
 0x430   : > { %v3074_v1 = vpop.eup %3073  ;;  %2405 = vst [vmem:[%s4087_s30 + $0x40] sm:$0xff] %v3072_v48  ;;  %v2269_v3 = vmul.f32 1.442695, %v2221_v59  ;;  %v2146_v55 = vadd.f32 %v2819_v61, %v4073_v50 }
 0x431   : > { %v2313_v8 = vadd.f32 1.0, %v3074_v1  ;;  %v2821_v5 = vpop.f32.mrf.mxu1 }
 0x432   : > { %3087 = vpow2.f32 %v2269_v3  ;;  %v2222_v11 = vsub.f32 0.0, %v2146_v55  ;;  %v2822_v26 = vadd.f32 %v2821_v5, %v2820_v0 }
 0x433   : > { %v3076_v7 = vpop.eup %3075  ;;  %3089 = vrcp.f32 %v2313_v8  ;;  %v2823_v10 = vpop.f32.mrf.mxu1 }
 0x434   : > { %v3078_v22 = vpop.eup %3077  ;;  %2406 = vst [vmem:[%s4087_s30 + $0x48] sm:$0xff] %v3076_v7  ;;  %v2271_v30 = vmul.f32 1.442695, %v2222_v11  ;;  %v2151_v62 = vadd.f32 %v2822_v26, %v4073_v50 }
 0x435   : > { %v2314_v39 = vadd.f32 1.0, %v3078_v22  ;;  %v2824_v54 = vpop.f32.mrf.mxu1 }
 0x436   : > { %3091 = vpow2.f32 %v2271_v30  ;;  %v2223_v12 = vsub.f32 0.0, %v2151_v62  ;;  %v2825_v4 = vadd.f32 %v2824_v54, %v2823_v10 }
 0x437   : > { %v3080_v25 = vpop.eup %3079  ;;  %3093 = vrcp.f32 %v2314_v39  ;;  %v2826_v14 = vpop.f32.mrf.mxu1 }
 0x438   : > { %v3082_v34 = vpop.eup %3081  ;;  %2407 = vst [vmem:[%s4087_s30 + $0x50] sm:$0xff] %v3080_v25  ;;  %v2273_v6 = vmul.f32 1.442695, %v2223_v12  ;;  %v2154_v24 = vadd.f32 %v2825_v4, %v4073_v50 }
 0x439   : > { %v2315_v16 = vadd.f32 1.0, %v3082_v34  ;;  %v2827_v27 = vpop.f32.mrf.mxu1 }
 0x43a   : > { %3095 = vpow2.f32 %v2273_v6  ;;  %v2224_v28 = vsub.f32 0.0, %v2154_v24  ;;  %v2828_v20 = vadd.f32 %v2827_v27, %v2826_v14 }
 0x43b   : > { %v3084_v44 = vpop.eup %3083  ;;  %3097 = vrcp.f32 %v2315_v16  ;;  %v2829_v15 = vpop.f32.mrf.mxu1 }
 0x43c   : > { %v3086_v19 = vpop.eup %3085  ;;  %2408 = vst [vmem:[%s4087_s30 + $0x58] sm:$0xff] %v3084_v44  ;;  %v2275_v21 = vmul.f32 1.442695, %v2224_v28  ;;  %v2159_v13 = vadd.f32 %v2828_v20, %v4073_v50 }
 0x43d   : > { %v2316_v53 = vadd.f32 1.0, %v3086_v19  ;;  %v2830_v29 = vpop.f32.mrf.mxu1 }
 0x43e   : > { %3099 = vpow2.f32 %v2275_v21  ;;  %v2225_v31 = vsub.f32 0.0, %v2159_v13  ;;  %v2831_v23 = vadd.f32 %v2830_v29, %v2829_v15 }
 0x43f   : > { %v3088_v32 = vpop.eup %3087  ;;  %3101 = vrcp.f32 %v2316_v53  ;;  %v2832_v37 = vpop.f32.mrf.mxu1 }
 0x440   : > { %v3090_v63 = vpop.eup %3089  ;;  %v2317_v38 = vadd.f32 1.0, %v3088_v32  ;;  %v2277_v40 = vmul.f32 1.442695, %v2225_v31  ;;  %v2162_v9 = vadd.f32 %v2831_v23, %v4073_v50 }
 0x441   : > { %2409 = vst [vmem:[%s4087_s30 + $0x60] sm:$0xff] %v3090_v63  ;;  %v2833_v36 = vpop.f32.mrf.mxu1 }
 0x442   : > { %3103 = vrcp.f32 %v2317_v38  ;;  %v2226_v33 = vsub.f32 0.0, %v2162_v9  ;;  %v2834_v42 = vadd.f32 %v2833_v36, %v2832_v37 }
 0x443   : > { %v3092_v43 = vpop.eup %3091  ;;  %3105 = vpow2.f32 %v2277_v40  ;;  %v2835_v41 = vpop.f32.mrf.mxu1 }
 0x444   : > { %v3094_v17 = vpop.eup %3093  ;;  %v2318_v45 = vadd.f32 1.0, %v3092_v43  ;;  %v2279_v46 = vmul.f32 1.442695, %v2226_v33  ;;  %v2167_v35 = vadd.f32 %v2834_v42, %v4073_v50 }
 0x445   : > { %2410 = vst [vmem:[%s4087_s30 + $0x68] sm:$0xff] %v3094_v17  ;;  %v2836_v49 = vpop.f32.mrf.mxu1 }
 0x446   : > { %3107 = vrcp.f32 %v2318_v45  ;;  %v2227_v51 = vsub.f32 0.0, %v2167_v35  ;;  %v2837_v52 = vadd.f32 %v2836_v49, %v2835_v41 }
 0x447   : > { %v3096_v56 = vpop.eup %3095  ;;  %3109 = vpow2.f32 %v2279_v46  ;;  %v2838_v2 = vpop.f32.mrf.mxu1 }
 0x448   : > { %v3098_v47 = vpop.eup %3097  ;;  %v2319_v57 = vadd.f32 1.0, %v3096_v56  ;;  %v2281_v18 = vmul.f32 1.442695, %v2227_v51  ;;  %v2170_v58 = vadd.f32 %v2837_v52, %v4073_v50 }
 0x449   : > { %2411 = vst [vmem:[%s4087_s30 + $0x70] sm:$0xff] %v3098_v47  ;;  %v2839_v60 = vpop.f32.mrf.mxu1 }
 0x44a   : > { %3111 = vrcp.f32 %v2319_v57  ;;  %v2228_v59 = vsub.f32 0.0, %v2170_v58  ;;  %v2840_v61 = vadd.f32 %v2839_v60, %v2838_v2 }
 0x44b   : > { %v3100_v48 = vpop.eup %3099  ;;  %3113 = vpow2.f32 %v2281_v18  ;;  %v2841_v0 = vpop.f32.mrf.mxu1 }
 0x44c   : > { %v3102_v1 = vpop.eup %3101  ;;  %v2320_v3 = vadd.f32 1.0, %v3100_v48  ;;  %v2283_v55 = vmul.f32 1.442695, %v2228_v59  ;;  %v2175_v8 = vadd.f32 %v2840_v61, %v4073_v50 }
 0x44d   : > { %2412 = vst [vmem:[%s4087_s30 + $0x78] sm:$0xff] %v3102_v1  ;;  %v2842_v5 = vpop.f32.mrf.mxu1 }
 0x44e   : > { %3115 = vrcp.f32 %v2320_v3  ;;  %v2229_v11 = vsub.f32 0.0, %v2175_v8  ;;  %v2843_v26 = vadd.f32 %v2842_v5, %v2841_v0 }
 0x44f   : > { %v3104_v7 = vpop.eup %3103  ;;  %3117 = vpow2.f32 %v2283_v55  ;;  %v2844_v10 = vpop.f32.mrf.mxu1 }
 0x450   : > { %v3106_v22 = vpop.eup %3105  ;;  %2413 = vst [vmem:[%s4087_s30 + $0x80] sm:$0xff] %v3104_v7  ;;  %v2285_v30 = vmul.f32 1.442695, %v2229_v11  ;;  %v2178_v62 = vadd.f32 %v2843_v26, %v4073_v50 }
 0x451   : > { %v2321_v39 = vadd.f32 1.0, %v3106_v22  ;;  %v2845_v54 = vpop.f32.mrf.mxu1 }
 0x452   : > { %3119 = vpow2.f32 %v2285_v30  ;;  %v2230_v12 = vsub.f32 0.0, %v2178_v62  ;;  %v2846_v4 = vadd.f32 %v2845_v54, %v2844_v10 }
 0x453   : > { %v3108_v25 = vpop.eup %3107  ;;  %3121 = vrcp.f32 %v2321_v39  ;;  %v2847_v14 = vpop.f32.mrf.mxu1 }
 0x454   : > { %v3110_v34 = vpop.eup %3109  ;;  %2414 = vst [vmem:[%s4087_s30 + $0x88] sm:$0xff] %v3108_v25  ;;  %v2287_v6 = vmul.f32 1.442695, %v2230_v12  ;;  %v2183_v24 = vadd.f32 %v2846_v4, %v4073_v50 }
 0x455   : > { %v2322_v16 = vadd.f32 1.0, %v3110_v34  ;;  %v2848_v27 = vpop.f32.mrf.mxu1 }
 0x456   : > { %3123 = vpow2.f32 %v2287_v6  ;;  %v2231_v28 = vsub.f32 0.0, %v2183_v24  ;;  %v2849_v20 = vadd.f32 %v2848_v27, %v2847_v14 }
 0x457   : > { %v3112_v44 = vpop.eup %3111  ;;  %3125 = vrcp.f32 %v2322_v16  ;;  %v2850_v15 = vpop.f32.mrf.mxu1 }
 0x458   : > { %v3114_v19 = vpop.eup %3113  ;;  %2415 = vst [vmem:[%s4087_s30 + $0x90] sm:$0xff] %v3112_v44  ;;  %v2289_v21 = vmul.f32 1.442695, %v2231_v28  ;;  %v2186_v13 = vadd.f32 %v2849_v20, %v4073_v50 }
 0x459   : > { %v2323_v53 = vadd.f32 1.0, %v3114_v19  ;;  %v2851_v29 = vpop.f32.mrf.mxu1 }
 0x45a   : > { %3127 = vpow2.f32 %v2289_v21  ;;  %v2232_v31 = vsub.f32 0.0, %v2186_v13  ;;  %v2852_v23 = vadd.f32 %v2851_v29, %v2850_v15 }
 0x45b   : > { %v3116_v32 = vpop.eup %3115  ;;  %3129 = vrcp.f32 %v2323_v53  ;;  %v2853_v37 = vpop.f32.mrf.mxu1 }
 0x45c   : > { %v3118_v63 = vpop.eup %3117  ;;  %2416 = vst [vmem:[%s4087_s30 + $0x98] sm:$0xff] %v3116_v32  ;;  %v2291_v38 = vmul.f32 1.442695, %v2232_v31  ;;  %v2191_v40 = vadd.f32 %v2852_v23, %v4073_v50 }
 0x45d   : > { %v2324_v9 = vadd.f32 1.0, %v3118_v63  ;;  %v2854_v36 = vpop.f32.mrf.mxu1 }
 0x45e   : > { %3131 = vpow2.f32 %v2291_v38  ;;  %v2233_v33 = vsub.f32 0.0, %v2191_v40  ;;  %v2855_v42 = vadd.f32 %v2854_v36, %v2853_v37 }
 0x45f   : > { %v3120_v43 = vpop.eup %3119  ;;  %3133 = vrcp.f32 %v2324_v9  ;;  %v2856_v41 = vpop.f32.mrf.mxu1 }
 0x460   : > { %v3122_v17 = vpop.eup %3121  ;;  %v2325_v45 = vadd.f32 1.0, %v3120_v43  ;;  %v2293_v46 = vmul.f32 1.442695, %v2233_v33  ;;  %v2194_v35 = vadd.f32 %v2855_v42, %v4073_v50 }
 0x461   : > { %2417 = vst [vmem:[%s4087_s30 + $0xa0] sm:$0xff] %v3122_v17  ;;  %v2857_v49 = vpop.f32.mrf.mxu1 }
 0x462   : > { %3135 = vrcp.f32 %v2325_v45  ;;  %v2234_v51 = vsub.f32 0.0, %v2194_v35  ;;  %v2858_v52 = vadd.f32 %v2857_v49, %v2856_v41 }
 0x463   : > { %v3124_v56 = vpop.eup %3123  ;;  %3137 = vpow2.f32 %v2293_v46  ;;  %v2859_v2 = vpop.f32.mrf.mxu1 }
 0x464   : > { %v3126_v47 = vpop.eup %3125  ;;  %v2326_v57 = vadd.f32 1.0, %v3124_v56  ;;  %v2295_v18 = vmul.f32 1.442695, %v2234_v51  ;;  %v2199_v58 = vadd.f32 %v2858_v52, %v4073_v50 }
 0x465   : > { %2418 = vst [vmem:[%s4087_s30 + $0xa8] sm:$0xff] %v3126_v47  ;;  %v2860_v60 = vpop.f32.mrf.mxu1 }
 0x466   : > { %3139 = vrcp.f32 %v2326_v57  ;;  %v2235_v59 = vsub.f32 0.0, %v2199_v58  ;;  %v2861_v61 = vadd.f32 %v2860_v60, %v2859_v2 }
 0x467   : > { %v3128_v48 = vpop.eup %3127  ;;  %3141 = vpow2.f32 %v2295_v18 }
 0x468   : > { %v3130_v0 = vpop.eup %3129  ;;  %v2327_v1 = vadd.f32 1.0, %v3128_v48  ;;  %v2297_v3 = vmul.f32 1.442695, %v2235_v59  ;;  %v2202_v55 = vadd.f32 %v2861_v61, %v4073_v50 }
 0x469   : > { %2419 = vst [vmem:[%s4087_s30 + $0xb0] sm:$0xff] %v3130_v0 }
 0x46a   : > { %3143 = vrcp.f32 %v2327_v1  ;;  %v2236_v8 = vsub.f32 0.0, %v2202_v55 }
 0x46b   : > { %v3132_v5 = vpop.eup %3131  ;;  %3145 = vpow2.f32 %v2297_v3 }
 0x46c   : > { %v3134_v11 = vpop.eup %3133  ;;  %v2328_v26 = vadd.f32 1.0, %v3132_v5  ;;  %v2299_v7 = vmul.f32 1.442695, %v2236_v8 }
 0x46d   : > { %2420 = vst [vmem:[%s4087_s30 + $0xb8] sm:$0xff] %v3134_v11 }
 0x46e   : > { %3147 = vrcp.f32 %v2328_v26 }
 0x46f   : > { %v3136_v10 = vpop.eup %3135  ;;  %3149 = vpow2.f32 %v2299_v7 }
 0x470   : > { %v3138_v22 = vpop.eup %3137  ;;  %2421 = vst [vmem:[%s4087_s30 + $0xc0] sm:$0xff] %v3136_v10 }
 0x471   : > { %v2329_v30 = vadd.f32 1.0, %v3138_v22 }
 0x473   : > { %v3140_v62 = vpop.eup %3139  ;;  %3151 = vrcp.f32 %v2329_v30 }
 0x474   : > { %v3142_v50 = vpop.eup %3141  ;;  %2422 = vst [vmem:[%s4087_s30 + $0xc8] sm:$0xff] %v3140_v62 }
 0x475   : > { %v2330_v39 = vadd.f32 1.0, %v3142_v50 }
 0x477   : > { %v3144_v54 = vpop.eup %3143  ;;  %3153 = vrcp.f32 %v2330_v39 }
 0x478   : > { %v3146_v12 = vpop.eup %3145  ;;  %2423 = vst [vmem:[%s4087_s30 + $0xd0] sm:$0xff] %v3144_v54 }
 0x479   : > { %v2331_v4 = vadd.f32 1.0, %v3146_v12 }
 0x47b   : > { %v3148_v25 = vpop.eup %3147  ;;  %3155 = vrcp.f32 %v2331_v4 }
 0x47c   : > { %v3150_v14 = vpop.eup %3149  ;;  %2424 = vst [vmem:[%s4087_s30 + $0xd8] sm:$0xff] %v3148_v25 }
 0x47d   : > { %v2332_v34 = vadd.f32 1.0, %v3150_v14 }
 0x47f   : > { %3157 = vrcp.f32 %v2332_v34 }
 0x480   : > { %v3152_v6 = vpop.eup %3151 }
 0x481   : > { %2425 = vst [vmem:[%s4087_s30 + $0xe0] sm:$0xff] %v3152_v6 }
 0x484   : > { %v3154_v24 = vpop.eup %3153 }
 0x485   : > { %2426 = vst [vmem:[%s4087_s30 + $0xe8] sm:$0xff] %v3154_v24 }
 0x488   : > { %v3156_v16 = vpop.eup %3155 }
 0x489   : > { %2427 = vst [vmem:[%s4087_s30 + $0xf0] sm:$0xff] %v3156_v16 }
 0x48c   : > { %v3158_v27 = vpop.eup %3157 }
 0x48d   : > { %2428 = vst [vmem:[%s4087_s30 + $0xf8] sm:$0xff] %v3158_v27 }
 0x48e   : > { %3172 = shalt.err (!%p3169_p3)
}
 0x48f   : > { %s3173_s29 = scalar_lea.hbm %s4148_s16, 4096  ;;  %s3177_s15 = scalar_lea.hbm %s4205_s10, 8192 }
 0x490   : > { %p3174_p4 = scmp.ne.s32.totalorder %s4148_s16, %s3173_s29  ;;  %p3178_p9 = scmp.lt.s32.totalorder %s4148_s16, %s4205_s10 }
 0x491   : > { %p3179_p10 = scmp.lt.s32.totalorder %s3177_s15, %s3173_s29 }
 0x492   : > { %p3175_p7 = pnand %p3174_p4, %p3324_p5 }
 0x493   : > { %p3180_p11 = por %p3179_p10, %p3178_p9 }
 0x494   : > { %p3176_p8 = pneg %p3175_p7 }
 0x496   : > { %p3181_p12 = pnand %p3180_p11, %p3176_p8 }
 0x498   : > { %3184 = shalt.err (!%p3181_p12)
}
 0x499   : > { %s3224_s22 = smov 128   ;;  %s3225_s24 = smov 8  }
 0x49a   : > { %2862 = dma.vmem_to_hbm [thread:$0]  (%p3324_p5), %s4150_s13, 4096, %s4148_s16, %s4155_s25, %s3224_s22, %s3224_s22, %s3225_s24  }
 0x49b PF: > { %p2868_p13 = scmp.ge.s32.totalorder %s3219_s20, 2  ;;  %s2467_s14 = sand.u32 1, %s3207_s17  }
 0x49c   : > { %s2468_s29 = scalar_lea.sflag [#allocation3], %s2467_s14 }
 0x49d   : > { %p2865_p0 = pnand %p2868_p13, %p3328_p6 }
 0x49f   : > { %p2866_p1 = pneg %p2865_p0 }
 0x4a1   : > { %3202 = dma.done.wait (%p2866_p1), %s2468_s29, 4096  }
 0x4a2   : > { %3204 = vsyncadd (%p2866_p1), %s2468_s29, 4294963200  ;;  %s4210_s30 = sld [smem:[#allocation5_spill]]  ;;  %p22_p2 = scmp.ge.s32.totalorder %s3311_s23, 4  }
 0x4a3   : > { %s4211_s17 = smov %s3211_s18  ;;  %s4212_s18 = smov %s3215_s19 }
 0x4a4   : > { %s4214_s20 = smov %s3311_s23  ;;  %24 = sbr.rel (!%p22_p2) target bundleno = 3 (0x3), region = 110 }
 0x4a8   : > { %s4213_s19 = smov %s4210_s30 }
 0x4a9   :  { %2481 = vsyncpa [#allocation3], 1 }
 0x4aa   :  { %2483 = vsyncpa [#allocation3 + $0x1], 1 }

</bundles_post_ra>
